<compile_context>
chip_gen: v6e
topology: v6e:2x2x1
jax: 0.10.0
libtpu: 0.0.40
codegen_flags: <defaults>
</compile_context>

<pallas_src>
import jax
import jax.numpy as jnp
from jax.experimental import pallas as pl
from jax.experimental.pallas import tpu as pltpu

INPUT_SIZE = 784
HIDDEN_SIZE = 500
NUM_CLASSES = 10

HIDDEN_PAD = 512   # 500 -> multiple of 128 (zero-padded, exact)
OUT_PAD = 128      # 10  -> lane-dense output slab (zero-padded, exact)


def mlp_kernel(x_ref, w1_ref, b1_ref, w2_ref, b2_ref, o_ref):
    # fc1: (TM, 784)bf16 @ (784, 512)bf16 -> f32 accumulation on the MXU
    h = jnp.dot(x_ref[...], w1_ref[...], preferred_element_type=jnp.float32)
    h = jnp.maximum(h + b1_ref[...], 0.0)                       # bias + ReLU in f32
    # fc2: (TM, 512)bf16 @ (512, 128)bf16 -> f32 accumulation
    out = jnp.dot(h.astype(w2_ref.dtype), w2_ref[...],
                  preferred_element_type=jnp.float32)
    o_ref[...] = (out + b2_ref[...]).astype(o_ref.dtype)


def mlp_forward(x, w1, b1, w2, b2, *, tm=128):
    """x: (B, 784) f32; w1: (784, 500); b1: (1, 500); w2: (500, 10); b2: (1, 10)."""
    B = x.shape[0]
    out_dtype = x.dtype

    # ---- wrapper-side padding / dtype prep (layout plumbing, not compute) ----
    b1 = b1.reshape(1, -1)
    b2 = b2.reshape(1, -1)
    w1p = jnp.pad(w1, ((0, 0), (0, HIDDEN_PAD - HIDDEN_SIZE))).astype(jnp.bfloat16)
    b1p = jnp.pad(b1, ((0, 0), (0, HIDDEN_PAD - HIDDEN_SIZE))).astype(jnp.float32)
    w2p = jnp.pad(w2, ((0, HIDDEN_PAD - HIDDEN_SIZE),
                       (0, OUT_PAD - NUM_CLASSES))).astype(jnp.bfloat16)
    b2p = jnp.pad(b2, ((0, 0), (0, OUT_PAD - NUM_CLASSES))).astype(jnp.float32)

    # Pad batch to a multiple of the row tile; cast activations to bf16.
    B_pad = ((B + tm - 1) // tm) * tm
    xp = jnp.pad(x, ((0, B_pad - B), (0, 0))).astype(jnp.bfloat16)

    cost = pl.CostEstimate(
        flops=2 * B_pad * (INPUT_SIZE * HIDDEN_PAD + HIDDEN_PAD * OUT_PAD),
        transcendentals=0,
        bytes_accessed=(xp.size * 2 + w1p.size * 2 + w2p.size * 2
                        + b1p.size * 4 + b2p.size * 4
                        + B_pad * OUT_PAD * jnp.dtype(out_dtype).itemsize),
    )

    out_padded = pl.pallas_call(
        mlp_kernel,
        out_shape=jax.ShapeDtypeStruct((B_pad, OUT_PAD), out_dtype),
        grid_spec=pltpu.PrefetchScalarGridSpec(
            num_scalar_prefetch=0,
            grid=(B_pad // tm,),
            in_specs=[
                pl.BlockSpec((tm, INPUT_SIZE), lambda i: (i, 0)),          # x streams
                pl.BlockSpec((INPUT_SIZE, HIDDEN_PAD), lambda i: (0, 0)),  # resident
                pl.BlockSpec((1, HIDDEN_PAD), lambda i: (0, 0)),           # resident
                pl.BlockSpec((HIDDEN_PAD, OUT_PAD), lambda i: (0, 0)),     # resident
                pl.BlockSpec((1, OUT_PAD), lambda i: (0, 0)),              # resident
            ],
            out_specs=pl.BlockSpec((tm, OUT_PAD), lambda i: (i, 0)),
        ),
        compiler_params=pltpu.CompilerParams(
            dimension_semantics=("parallel",),
        ),
        cost_estimate=cost,
    )(xp, w1p, b1p, w2p, b2p)

    return out_padded[:B, :NUM_CLASSES]


def init_params(key):
    """Deterministic init mimicking nn.Linear's U(-1/sqrt(fan_in), 1/sqrt(fan_in))."""
    k1, k2, k3, k4 = jax.random.split(key, 4)
    bound1 = 1.0 / jnp.sqrt(float(INPUT_SIZE))
    bound2 = 1.0 / jnp.sqrt(float(HIDDEN_SIZE))
    # Stored directly in (in, out) layout (transpose of PyTorch's weight).
    w1 = jax.random.uniform(k1, (INPUT_SIZE, HIDDEN_SIZE), jnp.float32,
                            minval=-bound1, maxval=bound1)
    b1 = jax.random.uniform(k2, (1, HIDDEN_SIZE), jnp.float32,
                            minval=-bound1, maxval=bound1)
    w2 = jax.random.uniform(k3, (HIDDEN_SIZE, NUM_CLASSES), jnp.float32,
                            minval=-bound2, maxval=bound2)
    b2 = jax.random.uniform(k4, (1, NUM_CLASSES), jnp.float32,
                            minval=-bound2, maxval=bound2)
    return w1, b1, w2, b2


if __name__ == "__main__":
    key = jax.random.PRNGKey(0)
    k_x, k_p = jax.random.split(key)

    batch = 8
    x = jax.random.normal(k_x, (batch, INPUT_SIZE), jnp.float32)
    w1, b1, w2, b2 = init_params(k_p)

    out = mlp_forward(x, w1, b1, w2, b2)
    out = jax.block_until_ready(out)
    assert out.shape == (batch, NUM_CLASSES), out.shape

    # Reference mirroring the kernel's bf16 operand / f32 accumulate math.
    xb = x.astype(jnp.bfloat16).astype(jnp.float32)
    w1b = w1.astype(jnp.bfloat16).astype(jnp.float32)
    w2b = w2.astype(jnp.bfloat16).astype(jnp.float32)
    h = jnp.maximum(xb @ w1b + b1, 0.0).astype(jnp.bfloat16).astype(jnp.float32)
    ref_bf16 = h @ w2b + b2
    assert jnp.allclose(out, ref_bf16, atol=1e-2, rtol=1e-2), "mismatch vs bf16 reference"

    # Looser sanity check vs the pure-f32 PyTorch-equivalent forward.
    ref_f32 = jnp.maximum(x @ w1 + b1, 0.0) @ w2 + b2
    assert jnp.allclose(out, ref_f32, atol=5e-2, rtol=5e-2), "mismatch vs f32 reference"

    print("KERNEL_OK")
</pallas_src>

<mosaic_0001>
module attributes {stable_mosaic.version = 11 : i64} {
  func.func @mlp_kernel(%arg0: i32, %arg1: memref<128x784xbf16, #tpu.memory_space<vmem>>, %arg2: memref<784x512xbf16, #tpu.memory_space<vmem>>, %arg3: memref<1x512xf32, #tpu.memory_space<vmem>>, %arg4: memref<512x128xbf16, #tpu.memory_space<vmem>>, %arg5: memref<1x128xf32, #tpu.memory_space<vmem>>, %arg6: memref<128x128xf32, #tpu.memory_space<vmem>>) attributes {dimension_semantics = [#tpu.dimension_semantics<parallel>], iteration_bounds = array<i64: 1>, scalar_prefetch = 0 : i64, scratch_operands = 0 : i64, tpu.core_type = #tpu.core_type<tc>, window_params = [{transform_indices = @transform_0, window_bounds = array<i64: 128, 784>}, {pipeline_mode = #tpu.pipeline_mode<synchronous>, transform_indices = @transform_1, window_bounds = array<i64: 784, 512>}, {pipeline_mode = #tpu.pipeline_mode<synchronous>, transform_indices = @transform_2, window_bounds = array<i64: 1, 512>}, {pipeline_mode = #tpu.pipeline_mode<synchronous>, transform_indices = @transform_3, window_bounds = array<i64: 512, 128>}, {pipeline_mode = #tpu.pipeline_mode<synchronous>, transform_indices = @transform_4, window_bounds = array<i64: 1, 128>}, {transform_indices = @transform_5, window_bounds = array<i64: 128, 128>}]} {
    %c0 = arith.constant 0 : index
    %c0_0 = arith.constant 0 : index
    %0 = vector.load %arg1[%c0, %c0_0] : memref<128x784xbf16, #tpu.memory_space<vmem>>, vector<128x784xbf16>
    %c0_1 = arith.constant 0 : index
    %c0_2 = arith.constant 0 : index
    %1 = vector.load %arg2[%c0_1, %c0_2] : memref<784x512xbf16, #tpu.memory_space<vmem>>, vector<784x512xbf16>
    %cst = arith.constant dense<0.000000e+00> : vector<128x512xf32>
    %2 = tpu.matmul %0, %1, %cst {dimension_numbers = #tpu.dot_dimension_numbers<[1], [0], [0], [1], [0, 0, 1, 1], [], []>} : vector<128x784xbf16>, vector<784x512xbf16>, vector<128x512xf32> -> vector<128x512xf32>
    %c0_3 = arith.constant 0 : index
    %c0_4 = arith.constant 0 : index
    %3 = vector.load %arg3[%c0_3, %c0_4] : memref<1x512xf32, #tpu.memory_space<vmem>>, vector<1x512xf32>
    %4 = vector.broadcast %3 : vector<1x512xf32> to vector<128x512xf32>
    %5 = arith.addf %2, %4 : vector<128x512xf32>
    %cst_5 = arith.constant 0.000000e+00 : f32
    %6 = vector.broadcast %cst_5 : f32 to vector<128x512xf32>
    %7 = arith.maximumf %5, %6 : vector<128x512xf32>
    %8 = arith.truncf %7 : vector<128x512xf32> to vector<128x512xbf16>
    %c0_6 = arith.constant 0 : index
    %c0_7 = arith.constant 0 : index
    %9 = vector.load %arg4[%c0_6, %c0_7] : memref<512x128xbf16, #tpu.memory_space<vmem>>, vector<512x128xbf16>
    %cst_8 = arith.constant dense<0.000000e+00> : vector<128x128xf32>
    %10 = tpu.matmul %8, %9, %cst_8 {dimension_numbers = #tpu.dot_dimension_numbers<[1], [0], [0], [1], [0, 0, 1, 1], [], []>} : vector<128x512xbf16>, vector<512x128xbf16>, vector<128x128xf32> -> vector<128x128xf32>
    %c0_9 = arith.constant 0 : index
    %c0_10 = arith.constant 0 : index
    %11 = vector.load %arg5[%c0_9, %c0_10] : memref<1x128xf32, #tpu.memory_space<vmem>>, vector<1x128xf32>
    %12 = vector.broadcast %11 : vector<1x128xf32> to vector<128x128xf32>
    %13 = arith.addf %10, %12 : vector<128x128xf32>
    %c0_11 = arith.constant 0 : index
    %c0_12 = arith.constant 0 : index
    %14 = vector.load %arg6[%c0_11, %c0_12] : memref<128x128xf32, #tpu.memory_space<vmem>>, vector<128x128xf32>
    tpu.vector_store %arg6[%c0_11, %c0_12], %13 {strides = array<i32>} : memref<128x128xf32, #tpu.memory_space<vmem>>, vector<128x128xf32>,
    return
  }
  func.func @transform_0(%arg0: i32) -> (i32, i32) {
    %c0_i32 = arith.constant 0 : i32
    %c0_i32_0 = arith.constant 0 : i32
    return %arg0, %c0_i32 : i32, i32
  }
  func.func @transform_1(%arg0: i32) -> (i32, i32) {
    %c0_i32 = arith.constant 0 : i32
    %c0_i32_0 = arith.constant 0 : i32
    %c0_i32_1 = arith.constant 0 : i32
    return %c0_i32, %c0_i32_0 : i32, i32
  }
  func.func @transform_2(%arg0: i32) -> (i32, i32) {
    %c0_i32 = arith.constant 0 : i32
    %c0_i32_0 = arith.constant 0 : i32
    %c0_i32_1 = arith.constant 0 : i32
    return %c0_i32, %c0_i32_0 : i32, i32
  }
  func.func @transform_3(%arg0: i32) -> (i32, i32) {
    %c0_i32 = arith.constant 0 : i32
    %c0_i32_0 = arith.constant 0 : i32
    %c0_i32_1 = arith.constant 0 : i32
    return %c0_i32, %c0_i32_0 : i32, i32
  }
  func.func @transform_4(%arg0: i32) -> (i32, i32) {
    %c0_i32 = arith.constant 0 : i32
    %c0_i32_0 = arith.constant 0 : i32
    %c0_i32_1 = arith.constant 0 : i32
    return %c0_i32, %c0_i32_0 : i32, i32
  }
  func.func @transform_5(%arg0: i32) -> (i32, i32) {
    %c0_i32 = arith.constant 0 : i32
    %c0_i32_0 = arith.constant 0 : i32
    return %arg0, %c0_i32 : i32, i32
  }
}

</mosaic_0001>

<bundles_post_ra>
// kernel: tpu_custom_call.1
= control target key start
LH: loop header
LB: loop body
LE: loop exit
PB: predicated region body
PF: predicated region fallthrough
CT: control target
= control target key end

     0   :  { %10 = vsyncpa [#allocation3], 0  ;;  %s4938_s0 = inlined_call_operand.vmem [shape: bf16[128,784], index: 0, kind: input, shape index: {}]   ;;  %s4939_s1 = inlined_call_operand.hbm [shape: bf16[784,512], index: 1, kind: input, shape index: {}]   ;;  %s4940_s2 = inlined_call_operand.vmem [shape: f32[1,512], index: 2, kind: input, shape index: {}]   ;;  %s4941_s3 = inlined_call_operand.vmem [shape: bf16[512,128], index: 3, kind: input, shape index: {}]   ;;  %s4942_s4 = inlined_call_operand.vmem [shape: f32[1,128], index: 4, kind: input, shape index: {}]   ;;  %s4943_s5 = inlined_call_operand.hbm [shape: f32[128,128], index: 5, kind: output, shape index: {}]  }
   0x1   :  { %11 = vsyncpa [#allocation4], 0  ;;  %s3993_s18 = smov [#allocation2]  }
   0x2   :  { %s19_s19 = sshll.u32 %s3993_s18, 4  ;;  %s20_s19 = int_to_ptr.vmem [resolvable:$true] %s19_s19 }
   0x3   :  { %s3957_s20 = scalar_lea.vmem %s20_s19, 25088  ;;  %p3962_p1 = scmp.lt.s32.totalorder %s20_s19, %s20_s19 }
   0x4   :  { %p3958_p0 = scmp.ne.s32.totalorder %s20_s19, %s3957_s20  ;;  %p3963_p2 = scmp.lt.s32.totalorder %s3957_s20, %s3957_s20 }
   0x6   :  { %p3964_p3 = por %p3963_p2, %p3962_p1 }
   0x8   :  { %p3965_p4 = pnand %p3964_p3, %p3958_p0 }
   0xa   :  { %3968 = shalt.err (!%p3965_p4)
}
   0xb   :  { %s3994_s21 = smov 256   ;;  %s3995_s22 = smov 16  }
   0xc   :  { %25 = dma.hbm_to_vmem [thread:$0]  %s4939_s1, 25088, %s20_s19, [#allocation3], %s3994_s21, %s3994_s21, %s3995_s22  }
   0xd   :  { %3989 = dma.done.wait [#allocation3], 25088  }
   0xe   :  { %3990 = vsyncadd [#allocation3], 4294942208  ;;  %v3529_v0 = vld [vmem:[#allocation2 + $0xe4] ss:$16 sps:$4 sm:$0xff]   ;;  %v3533_v2 = vld [vmem:[#allocation2 + $0xe0] ss:$16 sps:$4 sm:$0xff]  }
   0xf   :  { %v3531_v1 = vld [vmem:[#allocation2 + $0x2e4] ss:$16 sps:$4 sm:$0xff]   ;;  %1603 = vmatprep.subr.bf16.mxu0 %v3529_v0  ;;  %v3534_v3 = vld [vmem:[#allocation2 + $0x2e0] ss:$16 sps:$4 sm:$0xff]   ;;  %v3630_v51 = vld [vmem:[%s4938_s0 + $0xc] ss:$28 sps:$4 sm:$0xff]  }
  0x10   :  { %1716 = vmatprep.subr.bf16.mxu1 %v3531_v1  ;;  %v3535_v4 = vld [vmem:[#allocation2 + $0xc4] ss:$16 sps:$4 sm:$0xff]   ;;  %1604 = vmatpush1.bf16.msra.mxu0 %v3533_v2  ;;  %v3539_v6 = vld [vmem:[#allocation2 + $0xc0] ss:$16 sps:$4 sm:$0xff]   ;;  %vm1578_vm0 = vcmask 130048  }
  0x11   :  { %1717 = vmatpush1.bf16.msra.mxu1 %v3534_v3  ;;  %v3537_v5 = vld [vmem:[#allocation2 + $0x2c4] ss:$16 sps:$4 sm:$0xff]   ;;  %1605 = vmatprep.subr.bf16.mxu0 %v3535_v4  ;;  %v3540_v7 = vld [vmem:[#allocation2 + $0x2c0] ss:$16 sps:$4 sm:$0xff]  }
  0x12   :  { %1718 = vmatprep.subr.bf16.mxu1 %v3537_v5  ;;  %v3541_v8 = vld [vmem:[#allocation2 + $0xa4] ss:$16 sps:$4 sm:$0xff]   ;;  %v3545_v10 = vld [vmem:[#allocation2 + $0xa0] ss:$16 sps:$4 sm:$0xff]   ;;  %1748 = vmatprep.mubr.bf16.mxu1 %v3630_v51  ;;  %v4141_v51 = vld [vmem:[%s4938_s0 + $0x15c] ss:$28 sps:$4 sm:$0xff]  }
  0x13   :  { %v3543_v9 = vld [vmem:[#allocation2 + $0x2a4] ss:$16 sps:$4 sm:$0xff]   ;;  %v3546_v11 = vld [vmem:[#allocation2 + $0x2a0] ss:$16 sps:$4 sm:$0xff]  }
  0x14   :  { %1606 = vmatpush1.bf16.msra.mxu0 %v3539_v6  ;;  %v3547_v12 = vld [vmem:[#allocation2 + $0x84] ss:$16 sps:$4 sm:$0xff]   ;;  %v3551_v14 = vld [vmem:[#allocation2 + $0x80] ss:$16 sps:$4 sm:$0xff]  }
  0x15   :  { %1719 = vmatpush1.bf16.msra.mxu1 %v3540_v7  ;;  %1607 = vmatprep.subr.bf16.mxu0 %v3541_v8  ;;  %v3549_v13 = vld [vmem:[#allocation2 + $0x284] ss:$16 sps:$4 sm:$0xff]   ;;  %v3552_v15 = vld [vmem:[#allocation2 + $0x280] ss:$16 sps:$4 sm:$0xff]  }
  0x16   :  { %1720 = vmatprep.subr.bf16.mxu1 %v3543_v9  ;;  %v3553_v16 = vld [vmem:[#allocation2 + $0x64] ss:$16 sps:$4 sm:$0xff]   ;;  %v3557_v18 = vld [vmem:[#allocation2 + $0x60] ss:$16 sps:$4 sm:$0xff]   ;;  %v3640_v9 = vld [vmem:[%s4938_s0 + $0x3c] ss:$28 sps:$4 sm:$0xff]  }
  0x17   :  { %v3555_v17 = vld [vmem:[#allocation2 + $0x264] ss:$16 sps:$4 sm:$0xff]   ;;  %v3558_v19 = vld [vmem:[#allocation2 + $0x260] ss:$16 sps:$4 sm:$0xff]  }
  0x18   :  { %1608 = vmatpush1.bf16.msra.mxu0 %v3545_v10  ;;  %v3559_v20 = vld [vmem:[#allocation2 + $0x44] ss:$16 sps:$4 sm:$0xff]   ;;  %v3563_v22 = vld [vmem:[#allocation2 + $0x40] ss:$16 sps:$4 sm:$0xff]  }
  0x19   :  { %1721 = vmatpush1.bf16.msra.mxu1 %v3546_v11  ;;  %1609 = vmatprep.subr.bf16.mxu0 %v3547_v12  ;;  %v3561_v21 = vld [vmem:[#allocation2 + $0x244] ss:$16 sps:$4 sm:$0xff]   ;;  %v3564_v23 = vld [vmem:[#allocation2 + $0x240] ss:$16 sps:$4 sm:$0xff]  }
  0x1a   :  { %1722 = vmatprep.subr.bf16.mxu1 %v3549_v13  ;;  %v3565_v24 = vld [vmem:[#allocation2 + $0x24] ss:$16 sps:$4 sm:$0xff]   ;;  %v3569_v26 = vld [vmem:[#allocation2 + $0x20] ss:$16 sps:$4 sm:$0xff]  }
  0x1b   :  { %v3567_v25 = vld [vmem:[#allocation2 + $0x224] ss:$16 sps:$4 sm:$0xff]   ;;  %v3570_v27 = vld [vmem:[#allocation2 + $0x220] ss:$16 sps:$4 sm:$0xff]  }
  0x1c   :  { %1610 = vmatpush1.bf16.msra.mxu0 %v3551_v14  ;;  %v3571_v28 = vld [vmem:[#allocation2 + $0x4] ss:$16 sps:$4 sm:$0xff]   ;;  %v3575_v30 = vld [vmem:[#allocation2] ss:$16 sps:$4 sm:$0xff]  }
  0x1d   :  { %1723 = vmatpush1.bf16.msra.mxu1 %v3552_v15  ;;  %1611 = vmatprep.subr.bf16.mxu0 %v3553_v16  ;;  %v3573_v29 = vld [vmem:[#allocation2 + $0x204] ss:$16 sps:$4 sm:$0xff]   ;;  %v3576_v31 = vld [vmem:[#allocation2 + $0x200] ss:$16 sps:$4 sm:$0xff]  }
  0x1e   :  { %1724 = vmatprep.subr.bf16.mxu1 %v3555_v17  ;;  %v3577_v32 = vld [vmem:[#allocation2 + $0x1e4] ss:$16 sps:$4 sm:$0xff]   ;;  %v3581_v34 = vld [vmem:[#allocation2 + $0x1e0] ss:$16 sps:$4 sm:$0xff]  }
  0x1f   :  { %v3579_v33 = vld [vmem:[#allocation2 + $0x3e4] ss:$16 sps:$4 sm:$0xff]   ;;  %v3582_v35 = vld [vmem:[#allocation2 + $0x3e0] ss:$16 sps:$4 sm:$0xff]  }
  0x20   :  { %1612 = vmatpush1.bf16.msra.mxu0 %v3557_v18  ;;  %v3583_v36 = vld [vmem:[#allocation2 + $0x1c4] ss:$16 sps:$4 sm:$0xff]   ;;  %v3587_v38 = vld [vmem:[#allocation2 + $0x1c0] ss:$16 sps:$4 sm:$0xff]   ;;  %v3654_v18 = vld [vmem:[%s4938_s0 + $0x7c] ss:$28 sps:$4 sm:$0xff]  }
  0x21   :  { %1725 = vmatpush1.bf16.msra.mxu1 %v3558_v19  ;;  %1613 = vmatprep.subr.bf16.mxu0 %v3559_v20  ;;  %v3585_v37 = vld [vmem:[#allocation2 + $0x3c4] ss:$16 sps:$4 sm:$0xff]   ;;  %v3588_v39 = vld [vmem:[#allocation2 + $0x3c0] ss:$16 sps:$4 sm:$0xff]  }
  0x22   :  { %1726 = vmatprep.subr.bf16.mxu1 %v3561_v21  ;;  %v3589_v40 = vld [vmem:[#allocation2 + $0x1a4] ss:$16 sps:$4 sm:$0xff]   ;;  %v3593_v42 = vld [vmem:[#allocation2 + $0x1a0] ss:$16 sps:$4 sm:$0xff]  }
  0x23   :  { %v3591_v41 = vld [vmem:[#allocation2 + $0x3a4] ss:$16 sps:$4 sm:$0xff]   ;;  %v3594_v43 = vld [vmem:[#allocation2 + $0x3a0] ss:$16 sps:$4 sm:$0xff]  }
  0x24   :  { %1614 = vmatpush1.bf16.msra.mxu0 %v3563_v22  ;;  %v3595_v44 = vld [vmem:[#allocation2 + $0x184] ss:$16 sps:$4 sm:$0xff]   ;;  %v3599_v46 = vld [vmem:[#allocation2 + $0x180] ss:$16 sps:$4 sm:$0xff]  }
  0x25   :  { %1727 = vmatpush1.bf16.msra.mxu1 %v3564_v23  ;;  %1615 = vmatprep.subr.bf16.mxu0 %v3565_v24  ;;  %v3597_v45 = vld [vmem:[#allocation2 + $0x384] ss:$16 sps:$4 sm:$0xff]   ;;  %v3600_v47 = vld [vmem:[#allocation2 + $0x380] ss:$16 sps:$4 sm:$0xff]  }
  0x26   :  { %1728 = vmatprep.subr.bf16.mxu1 %v3567_v25  ;;  %v3601_v48 = vld [vmem:[#allocation2 + $0x164] ss:$16 sps:$4 sm:$0xff]   ;;  %v3605_v52 = vld [vmem:[#allocation2 + $0x160] ss:$16 sps:$4 sm:$0xff]   ;;  %v3664_v25 = vld [vmem:[%s4938_s0 + $0xac] ss:$28 sps:$4 sm:$0xff]  }
  0x27   :  { %v3627_v49 = vld [vmem:[%s4938_s0 + $0x4] ss:$28 sps:$4 sm:$0xff]   ;;  %v3644_v13 = vld [vmem:[%s4938_s0 + $0x38] ss:$28 sps:$4 sm:$0xff]   ;;  %v3656_v21 = vld [vmem:[%s4938_s0 + $0x70] ss:$28 sps:$4 sm:$0xff]  }
  0x28   :  { %1616 = vmatpush1.bf16.msra.mxu0 %v3569_v26  ;;  %v3603_v50 = vld [vmem:[#allocation2 + $0x364] ss:$16 sps:$4 sm:$0xff]   ;;  %1635 = vmatprep.mubr.bf16.mxu0 %v3627_v49  ;;  %v3606_v53 = vld [vmem:[#allocation2 + $0x360] ss:$16 sps:$4 sm:$0xff]  }
  0x29   :  { %1729 = vmatpush1.bf16.msra.mxu1 %v3570_v27  ;;  %1617 = vmatprep.subr.bf16.mxu0 %v3571_v28  ;;  %v3607_v54 = vld [vmem:[#allocation2 + $0x144] ss:$16 sps:$4 sm:$0xff]   ;;  %v3611_v56 = vld [vmem:[#allocation2 + $0x140] ss:$16 sps:$4 sm:$0xff]  }
  0x2a   :  { %1730 = vmatprep.subr.bf16.mxu1 %v3573_v29  ;;  %v3609_v55 = vld [vmem:[#allocation2 + $0x344] ss:$16 sps:$4 sm:$0xff]   ;;  %v3612_v57 = vld [vmem:[#allocation2 + $0x340] ss:$16 sps:$4 sm:$0xff]  }
  0x2b   :  { %v3613_v58 = vld [vmem:[#allocation2 + $0x124] ss:$16 sps:$4 sm:$0xff]   ;;  %v3617_v60 = vld [vmem:[#allocation2 + $0x120] ss:$16 sps:$4 sm:$0xff]  }
  0x2c   :  { %1618 = vmatpush1.bf16.msra.mxu0 %v3575_v30  ;;  %v3615_v59 = vld [vmem:[#allocation2 + $0x324] ss:$16 sps:$4 sm:$0xff]   ;;  %v3618_v61 = vld [vmem:[#allocation2 + $0x320] ss:$16 sps:$4 sm:$0xff]  }
  0x2d   :  { %1731 = vmatpush1.bf16.msra.mxu1 %v3576_v31  ;;  %1619 = vmatprep.subr.bf16.mxu0 %v3577_v32  ;;  %v3619_v62 = vld [vmem:[#allocation2 + $0x104] ss:$16 sps:$4 sm:$0xff]   ;;  %v3623_v0 = vld [vmem:[#allocation2 + $0x100] ss:$16 sps:$4 sm:$0xff]  }
  0x2e   :  { %1732 = vmatprep.subr.bf16.mxu1 %v3579_v33  ;;  %v3621_v63 = vld [vmem:[#allocation2 + $0x304] ss:$16 sps:$4 sm:$0xff]   ;;  %v3624_v1 = vld [vmem:[#allocation2 + $0x300] ss:$16 sps:$4 sm:$0xff]  }
  0x2f   :  { %v3633_v2 = vld [vmem:[#allocation2 + $0x4e4] ss:$16 sps:$4 sm:$0xff]   ;;  %v3625_v4 = vld [vmem:[%s4938_s0] ss:$28 sps:$4 sm:$0xff]   ;;  %v4083_v30 = vld [vmem:[%s4938_s0 + $0xb0] ss:$28 sps:$4 sm:$0xff]  }
  0x30   :  { %1620 = vmatpush2.bf16.msra.mxu0 %v3581_v34  ;;  %v3636_v3 = vld [vmem:[#allocation2 + $0x604] ss:$16 sps:$4 sm:$0xff]   ;;  %v3631_v6 = vld [vmem:[#allocation2 + $0x4e0] ss:$16 sps:$4 sm:$0xff]   ;;  %v4093_v34 = vld [vmem:[%s4938_s0 + $0xec] ss:$28 sps:$4 sm:$0xff]  }
  0x31   :  { %1733 = vmatpush2.bf16.msra.mxu1 %v3582_v35  ;;  %1621 = vmatprep.subr.bf16.mxu0 %v3583_v36  ;;  %v3628_v5 = vld [vmem:[%s4938_s0 + $0x8] ss:$28 sps:$4 sm:$0xff]   ;;  %v3634_v7 = vld [vmem:[#allocation2 + $0x600] ss:$16 sps:$4 sm:$0xff]   ;;  %v3657_v22 = vld [vmem:[%s4938_s0 + $0x78] ss:$28 sps:$4 sm:$0xff]  }
  0x32   :  { %1734 = vmatprep.subr.bf16.mxu1 %v3585_v37  ;;  %v3639_v8 = vld [vmem:[#allocation2 + $0x4c4] ss:$16 sps:$4 sm:$0xff]   ;;  %v3637_v11 = vld [vmem:[#allocation2 + $0x4c0] ss:$16 sps:$4 sm:$0xff]   ;;  %v3733_v35 = vld [vmem:[#allocation2 + $0x2ec] ss:$16 sps:$4 sm:$0xff]  }
  0x33   :  { %v3642_v10 = vld [vmem:[%s4938_s0 + $0x44] ss:$28 sps:$4 sm:$0xff]   ;;  %v3652_v17 = vld [vmem:[%s4938_s0 + $0x74] ss:$28 sps:$4 sm:$0xff]  }
  0x34   :  { %1622 = vmatpush2.bf16.msra.mxu0 %v3587_v38  ;;  %v3648_v12 = vld [vmem:[#allocation2 + $0x4a4] ss:$16 sps:$4 sm:$0xff]   ;;  %v3645_v14 = vld [vmem:[%s4938_s0 + $0x40] ss:$28 sps:$4 sm:$0xff]  }
  0x35   :  { %1735 = vmatpush2.bf16.msra.mxu1 %v3588_v39  ;;  %1623 = vmatprep.subr.bf16.mxu0 %v3589_v40  ;;  %v3646_v15 = vld [vmem:[#allocation2 + $0x4a0] ss:$16 sps:$4 sm:$0xff]   ;;  %v3651_v16 = vld [vmem:[#allocation2 + $0x484] ss:$16 sps:$4 sm:$0xff]  }
  0x36   :  { %1736 = vmatprep.subr.bf16.mxu1 %v3591_v41  ;;  %v3649_v19 = vld [vmem:[#allocation2 + $0x480] ss:$16 sps:$4 sm:$0xff]   ;;  %v3660_v20 = vld [vmem:[#allocation2 + $0x464] ss:$16 sps:$4 sm:$0xff]   ;;  %v4112_v41 = vld [vmem:[%s4938_s0 + $0x11c] ss:$28 sps:$4 sm:$0xff]  }
  0x37   :  { %v3658_v23 = vld [vmem:[#allocation2 + $0x460] ss:$16 sps:$4 sm:$0xff]   ;;  %v3663_v24 = vld [vmem:[#allocation2 + $0x444] ss:$16 sps:$4 sm:$0xff]  }
  0x38   :  { %1624 = vmatpush2.bf16.msra.mxu0 %v3593_v42  ;;  %v3666_v26 = vld [vmem:[%s4938_s0 + $0xb4] ss:$28 sps:$4 sm:$0xff]   ;;  %v4078_v29 = vld [vmem:[%s4938_s0 + $0xa8] ss:$28 sps:$4 sm:$0xff]   ;;  %v4102_v38 = vld [vmem:[%s4938_s0 + $0xe0] ss:$28 sps:$4 sm:$0xff]  }
  0x39   :  { %1737 = vmatpush2.bf16.msra.mxu1 %v3594_v43  ;;  %1625 = vmatprep.subr.bf16.mxu0 %v3595_v44  ;;  %v3661_v27 = vld [vmem:[#allocation2 + $0x440] ss:$16 sps:$4 sm:$0xff]   ;;  %v3672_v28 = vld [vmem:[#allocation2 + $0x424] ss:$16 sps:$4 sm:$0xff]  }
  0x3a   :  { %1738 = vmatprep.subr.bf16.mxu1 %v3597_v45  ;;  %v3670_v31 = vld [vmem:[#allocation2 + $0x420] ss:$16 sps:$4 sm:$0xff]   ;;  %v3675_v32 = vld [vmem:[#allocation2 + $0x404] ss:$16 sps:$4 sm:$0xff]  }
  0x3b   :  { %v4088_v33 = vld [vmem:[%s4938_s0 + $0xe4] ss:$28 sps:$4 sm:$0xff]   ;;  %v4126_v45 = vld [vmem:[%s4938_s0 + $0x118] ss:$28 sps:$4 sm:$0xff]  }
  0x3c   :  { %1626 = vmatpush2.bf16.msra.mxu0 %v3599_v46  ;;  %v3673_v36 = vld [vmem:[#allocation2 + $0x400] ss:$16 sps:$4 sm:$0xff]   ;;  %v3684_v37 = vld [vmem:[#allocation2 + $0x5e4] ss:$16 sps:$4 sm:$0xff]  }
  0x3d   :  { %1739 = vmatpush2.bf16.msra.mxu1 %v3600_v47  ;;  %1627 = vmatprep.subr.bf16.mxu0 %v3601_v48  ;;  %v4107_v39 = vld [vmem:[%s4938_s0 + $0xe8] ss:$28 sps:$4 sm:$0xff]   ;;  %v3682_v40 = vld [vmem:[#allocation2 + $0x5e0] ss:$16 sps:$4 sm:$0xff]  }
  0x3e   :  { %1740 = vmatprep.subr.bf16.mxu1 %v3603_v50  ;;  %v3687_v42 = vld [vmem:[#allocation2 + $0x5c4] ss:$16 sps:$4 sm:$0xff]   ;;  %v3685_v44 = vld [vmem:[#allocation2 + $0x5c0] ss:$16 sps:$4 sm:$0xff]  }
  0x3f   :  { %v4117_v43 = vld [vmem:[%s4938_s0 + $0x124] ss:$28 sps:$4 sm:$0xff]   ;;  %v4136_v49 = vld [vmem:[%s4938_s0 + $0x154] ss:$28 sps:$4 sm:$0xff]  }
  0x40   :  { %1628 = vmatpush2.bf16.msra.mxu0 %v3605_v52  ;;  %v3696_v46 = vld [vmem:[#allocation2 + $0x5a4] ss:$16 sps:$4 sm:$0xff]   ;;  %v4131_v47 = vld [vmem:[%s4938_s0 + $0x120] ss:$28 sps:$4 sm:$0xff]  }
  0x41   :  { %1741 = vmatpush2.bf16.msra.mxu1 %v3606_v53  ;;  %1629 = vmatprep.subr.bf16.mxu0 %v3607_v54  ;;  %v3694_v48 = vld [vmem:[#allocation2 + $0x5a0] ss:$16 sps:$4 sm:$0xff]   ;;  %v3699_v50 = vld [vmem:[#allocation2 + $0x584] ss:$16 sps:$4 sm:$0xff]  }
  0x42   :  { %1742 = vmatprep.subr.bf16.mxu1 %v3609_v55  ;;  %v3697_v52 = vld [vmem:[#allocation2 + $0x580] ss:$16 sps:$4 sm:$0xff]   ;;  %v3708_v54 = vld [vmem:[#allocation2 + $0x564] ss:$16 sps:$4 sm:$0xff]  }
  0x43   :  { %v4150_v53 = vld [vmem:[%s4938_s0 + $0x150] ss:$28 sps:$4 sm:$0xff]   ;;  %v4155_v55 = vld [vmem:[%s4938_s0 + $0x158] ss:$28 sps:$4 sm:$0xff]  }
  0x44   :  { %1630 = vmatpush2.bf16.msra.mxu0 %v3611_v56  ;;  %v3706_v56 = vld [vmem:[#allocation2 + $0x560] ss:$16 sps:$4 sm:$0xff]  }
  0x45   :  { %1743 = vmatpush2.bf16.msra.mxu1 %v3612_v57  ;;  %1631 = vmatprep.subr.bf16.mxu0 %v3613_v58  ;;  %v3711_v57 = vld [vmem:[#allocation2 + $0x544] ss:$16 sps:$4 sm:$0xff]   ;;  %v4160_v58 = vld [vmem:[%s4938_s0 + $0x18c] ss:$28 sps:$4 sm:$0xff]  }
  0x46   :  { %1744 = vmatprep.subr.bf16.mxu1 %v3615_v59  ;;  %v4165_v59 = vld [vmem:[%s4938_s0 + $0x194] ss:$28 sps:$4 sm:$0xff]  }
  0x48   :  { %1632 = vmatpush2.bf16.msra.mxu0 %v3617_v60  ;;  %v3709_v60 = vld [vmem:[#allocation2 + $0x540] ss:$16 sps:$4 sm:$0xff]  }
  0x49   :  { %1745 = vmatpush2.bf16.msra.mxu1 %v3618_v61  ;;  %1633 = vmatprep.subr.bf16.mxu0 %v3619_v62  ;;  %v3720_v61 = vld [vmem:[#allocation2 + $0x524] ss:$16 sps:$4 sm:$0xff]  }
  0x4a   :  { %1746 = vmatprep.subr.bf16.mxu1 %v3621_v63  ;;  %v4174_v62 = vld [vmem:[%s4938_s0 + $0x188] ss:$28 sps:$4 sm:$0xff]   ;;  %v4179_v63 = vld [vmem:[%s4938_s0 + $0x190] ss:$28 sps:$4 sm:$0xff]  }
  0x4c   :  { %1634 = vmatpush2.bf16.msra.mxu0 %v3623_v0  ;;  %v3718_v0 = vld [vmem:[#allocation2 + $0x520] ss:$16 sps:$4 sm:$0xff]  }
  0x4d   :  { %1747 = vmatpush2.bf16.msra.mxu1 %v3624_v1  ;;  %1829 = vmatprep.subr.bf16.mxu0 %v3633_v2  ;;  %v4184_v1 = vld [vmem:[%s4938_s0 + $0x14] ss:$28 sps:$4 sm:$0xff]  }
  0x4e   :  { %1956 = vmatprep.subr.bf16.mxu1 %v3636_v3  ;;  %v3723_v2 = vld [vmem:[#allocation2 + $0x504] ss:$16 sps:$4 sm:$0xff]   ;;  %v3721_v3 = vld [vmem:[#allocation2 + $0x500] ss:$16 sps:$4 sm:$0xff]  }
  0x4f   :  { %1636 = vmatmul.mubr.bf16.vlgmr.msra.gmra.mxu0 %v3625_v4  ;;  %v3996_v4 = vmov 0  }
  0x50   :  { %1749 = vmatmul.mubr.bf16.vlgmr.msra.gmra.mxu1 %v3628_v5  ;;  %1830 = vmatpush1.bf16.msra.mxu0 %v3631_v6  ;;  %v3730_v5 = vld [vmem:[#allocation2 + $0xec] ss:$16 sps:$4 sm:$0xff]  }
  0x51   :  { %1957 = vmatpush1.bf16.msra.mxu1 %v3634_v7  ;;  %1831 = vmatprep.subr.bf16.mxu0 %v3639_v8  ;;  %v4193_v6 = vld [vmem:[%s4938_s0 + $0x10] ss:$28 sps:$4 sm:$0xff]   ;;  %v4198_v7 = vld [vmem:[%s4938_s0 + $0x18] ss:$28 sps:$4 sm:$0xff]  }
  0x52   :  { %1645 = vmatprep.mubr.bf16.mxu0 %v3640_v9  ;;  %1758 = vmatprep.mubr.bf16.mxu1 %v3642_v10  ;;  %v3728_v8 = vld [vmem:[#allocation2 + $0xe8] ss:$16 sps:$4 sm:$0xff]   ;;  %v3736_v10 = vld [vmem:[#allocation2 + $0xcc] ss:$16 sps:$4 sm:$0xff]  }
  0x53   :  { %2168 = vmatprep.subr.bf16.mxu1 %v3733_v35  ;;  %v3731_v9 = vld [vmem:[#allocation2 + $0x2e8] ss:$16 sps:$4 sm:$0xff]  }
  0x54   :  { %1832 = vmatpush1.bf16.msra.mxu0 %v3637_v11  ;;  %v3739_v11 = vld [vmem:[#allocation2 + $0x2cc] ss:$16 sps:$4 sm:$0xff]   ;;  %v3763_v35 = vld [vmem:[#allocation2 + $0x268] ss:$16 sps:$4 sm:$0xff]  }
  0x55   :  { %1833 = vmatprep.subr.bf16.mxu0 %v3648_v12  ;;  %v4203_v12 = vld [vmem:[%s4938_s0 + $0x4c] ss:$28 sps:$4 sm:$0xff]  }
  0x57   :  { %1646 = vmatmul.mubr.bf16.gmra.mxu0 %v3644_v13  ;;  %v3734_v13 = vld [vmem:[#allocation2 + $0xc8] ss:$16 sps:$4 sm:$0xff]  }
  0x58   :  { %1759 = vmatmul.mubr.bf16.gmra.mxu1 %v3645_v14  ;;  %1834 = vmatpush1.bf16.msra.mxu0 %v3646_v15  ;;  %v3737_v14 = vld [vmem:[#allocation2 + $0x2c8] ss:$16 sps:$4 sm:$0xff]  }
  0x59   :  { %1655 = vmatprep.mubr.bf16.mxu0 %v3652_v17  ;;  %1835 = vmatprep.subr.bf16.mxu0 %v3651_v16  ;;  %v4211_v15 = vld [vmem:[%s4938_s0 + $0x48] ss:$28 sps:$4 sm:$0xff]   ;;  %v3746_v16 = vld [vmem:[#allocation2 + $0xac] ss:$16 sps:$4 sm:$0xff]  }
  0x5a   :  { %1768 = vmatprep.mubr.bf16.mxu1 %v3654_v18  ;;  %v3749_v17 = vld [vmem:[#allocation2 + $0x2ac] ss:$16 sps:$4 sm:$0xff]  }
  0x5b   :  { %v4218_v18 = vld [vmem:[%s4938_s0 + $0x50] ss:$28 sps:$4 sm:$0xff]  }
  0x5c   :  { %1836 = vmatpush1.bf16.msra.mxu0 %v3649_v19  ;;  %v3744_v19 = vld [vmem:[#allocation2 + $0xa8] ss:$16 sps:$4 sm:$0xff]  }
  0x5d   :  { %1837 = vmatprep.subr.bf16.mxu0 %v3660_v20  ;;  %v3747_v20 = vld [vmem:[#allocation2 + $0x2a8] ss:$16 sps:$4 sm:$0xff]  }
  0x5f   :  { %1656 = vmatmul.mubr.bf16.gmra.mxu0 %v3656_v21  ;;  %v3752_v21 = vld [vmem:[#allocation2 + $0x8c] ss:$16 sps:$4 sm:$0xff]  }
  0x60   :  { %1769 = vmatmul.mubr.bf16.gmra.mxu1 %v3657_v22  ;;  %1838 = vmatpush1.bf16.msra.mxu0 %v3658_v23  ;;  %v3755_v22 = vld [vmem:[#allocation2 + $0x28c] ss:$16 sps:$4 sm:$0xff]   ;;  %v4223_v23 = vld [vmem:[%s4938_s0 + $0x84] ss:$28 sps:$4 sm:$0xff]  }
  0x61   :  { %1665 = vmatprep.mubr.bf16.mxu0 %v3664_v25  ;;  %1839 = vmatprep.subr.bf16.mxu0 %v3663_v24  ;;  %v3750_v24 = vld [vmem:[#allocation2 + $0x88] ss:$16 sps:$4 sm:$0xff]  }
  0x62   :  { %1778 = vmatprep.mubr.bf16.mxu1 %v3666_v26  ;;  %v3753_v25 = vld [vmem:[#allocation2 + $0x288] ss:$16 sps:$4 sm:$0xff]   ;;  %v4231_v26 = vld [vmem:[%s4938_s0 + $0x80] ss:$28 sps:$4 sm:$0xff]  }
  0x64   :  { %1840 = vmatpush1.bf16.msra.mxu0 %v3661_v27  ;;  %v3762_v27 = vld [vmem:[#allocation2 + $0x6c] ss:$16 sps:$4 sm:$0xff]  }
  0x65   :  { %1841 = vmatprep.subr.bf16.mxu0 %v3672_v28  ;;  %v3765_v28 = vld [vmem:[#allocation2 + $0x26c] ss:$16 sps:$4 sm:$0xff]  }
  0x67   :  { %1666 = vmatmul.mubr.bf16.gmra.mxu0 %v4078_v29 }
  0x68   :  { %1779 = vmatmul.mubr.bf16.gmra.mxu1 %v4083_v30  ;;  %1842 = vmatpush1.bf16.msra.mxu0 %v3670_v31  ;;  %v4238_v31 = vld [vmem:[%s4938_s0 + $0x88] ss:$28 sps:$4 sm:$0xff]  }
  0x69   :  { %1675 = vmatprep.mubr.bf16.mxu0 %v4088_v33  ;;  %1843 = vmatprep.subr.bf16.mxu0 %v3675_v32  ;;  %v3760_v32 = vld [vmem:[#allocation2 + $0x68] ss:$16 sps:$4 sm:$0xff]  }
  0x6a   :  { %1788 = vmatprep.mubr.bf16.mxu1 %v4093_v34 }
  0x6c   :  { %1844 = vmatpush1.bf16.msra.mxu0 %v3673_v36  ;;  %v3768_v36 = vld [vmem:[#allocation2 + $0x4c] ss:$16 sps:$4 sm:$0xff]  }
  0x6d   :  { %1845 = vmatprep.subr.bf16.mxu0 %v3684_v37  ;;  %v3771_v37 = vld [vmem:[#allocation2 + $0x24c] ss:$16 sps:$4 sm:$0xff]  }
  0x6f   :  { %1676 = vmatmul.mubr.bf16.gmra.mxu0 %v4102_v38 }
  0x70   :  { %1789 = vmatmul.mubr.bf16.gmra.mxu1 %v4107_v39  ;;  %1846 = vmatpush2.bf16.msra.mxu0 %v3682_v40  ;;  %v4243_v40 = vld [vmem:[%s4938_s0 + $0xbc] ss:$28 sps:$4 sm:$0xff]  }
  0x71   :  { %1685 = vmatprep.mubr.bf16.mxu0 %v4112_v41  ;;  %1847 = vmatprep.subr.bf16.mxu0 %v3687_v42  ;;  %v3766_v42 = vld [vmem:[#allocation2 + $0x48] ss:$16 sps:$4 sm:$0xff]  }
  0x72   :  { %1798 = vmatprep.mubr.bf16.mxu1 %v4117_v43 }
  0x74   :  { %1848 = vmatpush2.bf16.msra.mxu0 %v3685_v44  ;;  %v3769_v44 = vld [vmem:[#allocation2 + $0x248] ss:$16 sps:$4 sm:$0xff]  }
  0x75   :  { %1849 = vmatprep.subr.bf16.mxu0 %v3696_v46  ;;  %v3778_v46 = vld [vmem:[#allocation2 + $0x2c] ss:$16 sps:$4 sm:$0xff]  }
  0x77   :  { %1686 = vmatmul.mubr.bf16.gmra.mxu0 %v4126_v45 }
  0x78   :  { %1799 = vmatmul.mubr.bf16.gmra.mxu1 %v4131_v47  ;;  %1850 = vmatpush2.bf16.msra.mxu0 %v3694_v48  ;;  %v3781_v48 = vld [vmem:[#allocation2 + $0x22c] ss:$16 sps:$4 sm:$0xff]  }
  0x79   :  { %1695 = vmatprep.mubr.bf16.mxu0 %v4136_v49  ;;  %1851 = vmatprep.subr.bf16.mxu0 %v3699_v50  ;;  %v4253_v50 = vld [vmem:[%s4938_s0 + $0xb8] ss:$28 sps:$4 sm:$0xff]  }
  0x7a   :  { %1808 = vmatprep.mubr.bf16.mxu1 %v4141_v51 }
  0x7c   :  { %1852 = vmatpush2.bf16.msra.mxu0 %v3697_v52  ;;  %v4258_v52 = vld [vmem:[%s4938_s0 + $0xc0] ss:$28 sps:$4 sm:$0xff]  }
  0x7d   :  { %1853 = vmatprep.subr.bf16.mxu0 %v3708_v54  ;;  %v3776_v54 = vld [vmem:[#allocation2 + $0x28] ss:$16 sps:$4 sm:$0xff]  }
  0x7f   :  { %1696 = vmatmul.mubr.bf16.gmra.mxu0 %v4150_v53 }
  0x80   :  { %1809 = vmatmul.mubr.bf16.gmra.mxu1 %v4155_v55  ;;  %1854 = vmatpush2.bf16.msra.mxu0 %v3706_v56  ;;  %v3779_v56 = vld [vmem:[#allocation2 + $0x228] ss:$16 sps:$4 sm:$0xff]  }
  0x81   :  { %1705 = vmatprep.mubr.bf16.mxu0 %v4160_v58  ;;  %1855 = vmatprep.subr.bf16.mxu0 %v3711_v57  ;;  %v3784_v57 = vld [vmem:[#allocation2 + $0xc] ss:$16 sps:$4 sm:$0xff]  }
  0x82   :  { %1818 = vmatprep.mubr.bf16.mxu1 %v4165_v59 }
  0x84   :  { %1856 = vmatpush2.bf16.msra.mxu0 %v3709_v60  ;;  %v3787_v60 = vld [vmem:[#allocation2 + $0x20c] ss:$16 sps:$4 sm:$0xff]  }
  0x85   :  { %1857 = vmatprep.subr.bf16.mxu0 %v3720_v61  ;;  %v4263_v61 = vld [vmem:[%s4938_s0 + $0xf4] ss:$28 sps:$4 sm:$0xff]  }
  0x87   :  { %1706 = vmatmul.mubr.bf16.gmra.mxu0 %v4174_v62 }
  0x88   :  { %1819 = vmatmul.mubr.bf16.gmra.mxu1 %v4179_v63  ;;  %1858 = vmatpush2.bf16.msra.mxu0 %v3718_v0  ;;  %v3782_v0 = vld [vmem:[#allocation2 + $0x8] ss:$16 sps:$4 sm:$0xff]  }
  0x89   :  { %1861 = vmatprep.mubr.bf16.mxu0 %v4184_v1  ;;  %1859 = vmatprep.subr.bf16.mxu0 %v3723_v2  ;;  %v3785_v2 = vld [vmem:[#allocation2 + $0x208] ss:$16 sps:$4 sm:$0xff]  }
  0x8a   :  { %1974 = vmatprep.mubr.bf16.mxu1 %v3996_v4 }
  0x8c   :  { %1860 = vmatpush2.bf16.msra.mxu0 %v3721_v3  ;;  %v3794_v3 = vld [vmem:[#allocation2 + $0x1ec] ss:$16 sps:$4 sm:$0xff]  }
  0x8d   :  { %2055 = vmatprep.subr.bf16.mxu0 %v3730_v5  ;;  %v3797_v5 = vld [vmem:[#allocation2 + $0x3ec] ss:$16 sps:$4 sm:$0xff]  }
  0x8f   :  { %1862 = vmatmul.mubr.bf16.vlgmr.msra.gmra.mxu0 %v4193_v6 }
  0x90   :  { %3345 = vmatmul.mubr.msk.bf16.vlgmr.msra.gmra.mxu1 %vm1578_vm0, %v4198_v7  ;;  %2056 = vmatpush1.bf16.msra.mxu0 %v3728_v8  ;;  %v4273_v8 = vld [vmem:[%s4938_s0 + $0xf0] ss:$28 sps:$4 sm:$0xff]  }
  0x91   :  { %2169 = vmatpush1.bf16.msra.mxu1 %v3731_v9  ;;  %2057 = vmatprep.subr.bf16.mxu0 %v3736_v10  ;;  %v4278_v9 = vld [vmem:[%s4938_s0 + $0xf8] ss:$28 sps:$4 sm:$0xff]  }
  0x92   :  { %2170 = vmatprep.subr.bf16.mxu1 %v3739_v11  ;;  %1871 = vmatprep.mubr.bf16.mxu0 %v4203_v12  ;;  %v3792_v10 = vld [vmem:[#allocation2 + $0x1e8] ss:$16 sps:$4 sm:$0xff]  }
  0x93   :  { %1984 = vmatprep.mubr.bf16.mxu1 %v3996_v4  ;;  %v3795_v11 = vld [vmem:[#allocation2 + $0x3e8] ss:$16 sps:$4 sm:$0xff]  }
  0x94   :  { %2058 = vmatpush1.bf16.msra.mxu0 %v3734_v13  ;;  %v3800_v13 = vld [vmem:[#allocation2 + $0x1cc] ss:$16 sps:$4 sm:$0xff]  }
  0x95   :  { %2171 = vmatpush1.bf16.msra.mxu1 %v3737_v14  ;;  %2059 = vmatprep.subr.bf16.mxu0 %v3746_v16  ;;  %v3803_v14 = vld [vmem:[#allocation2 + $0x3cc] ss:$16 sps:$4 sm:$0xff]  }
  0x96   :  { %2172 = vmatprep.subr.bf16.mxu1 %v3749_v17  ;;  %v4283_v16 = vld [vmem:[%s4938_s0 + $0x12c] ss:$28 sps:$4 sm:$0xff]  }
  0x97   :  { %1872 = vmatmul.mubr.bf16.gmra.mxu0 %v4211_v15  ;;  %v3798_v17 = vld [vmem:[#allocation2 + $0x1c8] ss:$16 sps:$4 sm:$0xff]  }
  0x98   :  { %3346 = vmatmul.mubr.msk.bf16.gmra.mxu1 %vm1578_vm0, %v4218_v18  ;;  %2060 = vmatpush1.bf16.msra.mxu0 %v3744_v19  ;;  %v3801_v19 = vld [vmem:[#allocation2 + $0x3c8] ss:$16 sps:$4 sm:$0xff]  }
  0x99   :  { %2173 = vmatpush1.bf16.msra.mxu1 %v3747_v20  ;;  %2061 = vmatprep.subr.bf16.mxu0 %v3752_v21  ;;  %v3810_v20 = vld [vmem:[#allocation2 + $0x1ac] ss:$16 sps:$4 sm:$0xff]  }
  0x9a   :  { %2174 = vmatprep.subr.bf16.mxu1 %v3755_v22  ;;  %1881 = vmatprep.mubr.bf16.mxu0 %v4223_v23  ;;  %v3813_v21 = vld [vmem:[#allocation2 + $0x3ac] ss:$16 sps:$4 sm:$0xff]   ;;  %v4293_v22 = vld [vmem:[%s4938_s0 + $0x128] ss:$28 sps:$4 sm:$0xff]  }
  0x9b   :  { %1994 = vmatprep.mubr.bf16.mxu1 %v3996_v4 }
  0x9c   :  { %2062 = vmatpush1.bf16.msra.mxu0 %v3750_v24  ;;  %v4298_v24 = vld [vmem:[%s4938_s0 + $0x130] ss:$28 sps:$4 sm:$0xff]  }
  0x9d   :  { %2175 = vmatpush1.bf16.msra.mxu1 %v3753_v25  ;;  %2063 = vmatprep.subr.bf16.mxu0 %v3762_v27  ;;  %v3808_v25 = vld [vmem:[#allocation2 + $0x1a8] ss:$16 sps:$4 sm:$0xff]  }
  0x9e   :  { %2176 = vmatprep.subr.bf16.mxu1 %v3765_v28  ;;  %v3811_v27 = vld [vmem:[#allocation2 + $0x3a8] ss:$16 sps:$4 sm:$0xff]   ;;  %v3816_v28 = vld [vmem:[#allocation2 + $0x18c] ss:$16 sps:$4 sm:$0xff]  }
  0x9f   :  { %1882 = vmatmul.mubr.bf16.gmra.mxu0 %v4231_v26 }
  0xa0   :  { %3347 = vmatmul.mubr.msk.bf16.gmra.mxu1 %vm1578_vm0, %v4238_v31  ;;  %2064 = vmatpush1.bf16.msra.mxu0 %v3760_v32  ;;  %v3819_v32 = vld [vmem:[#allocation2 + $0x38c] ss:$16 sps:$4 sm:$0xff]  }
  0xa1   :  { %2177 = vmatpush1.bf16.msra.mxu1 %v3763_v35  ;;  %2065 = vmatprep.subr.bf16.mxu0 %v3768_v36  ;;  %v3814_v35 = vld [vmem:[#allocation2 + $0x188] ss:$16 sps:$4 sm:$0xff]  }
  0xa2   :  { %2178 = vmatprep.subr.bf16.mxu1 %v3771_v37  ;;  %1891 = vmatprep.mubr.bf16.mxu0 %v4243_v40  ;;  %v3817_v36 = vld [vmem:[#allocation2 + $0x388] ss:$16 sps:$4 sm:$0xff]   ;;  %v4303_v37 = vld [vmem:[%s4938_s0 + $0x164] ss:$28 sps:$4 sm:$0xff]  }
  0xa3   :  { %2004 = vmatprep.mubr.bf16.mxu1 %v3996_v4 }
  0xa4   :  { %2066 = vmatpush1.bf16.msra.mxu0 %v3766_v42  ;;  %v3826_v42 = vld [vmem:[#allocation2 + $0x16c] ss:$16 sps:$4 sm:$0xff]  }
  0xa5   :  { %2179 = vmatpush1.bf16.msra.mxu1 %v3769_v44  ;;  %2067 = vmatprep.subr.bf16.mxu0 %v3778_v46  ;;  %v3829_v44 = vld [vmem:[#allocation2 + $0x36c] ss:$16 sps:$4 sm:$0xff]  }
  0xa6   :  { %2180 = vmatprep.subr.bf16.mxu1 %v3781_v48  ;;  %v4311_v46 = vld [vmem:[%s4938_s0 + $0x160] ss:$28 sps:$4 sm:$0xff]   ;;  %v4316_v48 = vld [vmem:[%s4938_s0 + $0x168] ss:$28 sps:$4 sm:$0xff]  }
  0xa7   :  { %1892 = vmatmul.mubr.bf16.gmra.mxu0 %v4253_v50 }
  0xa8   :  { %3348 = vmatmul.mubr.msk.bf16.gmra.mxu1 %vm1578_vm0, %v4258_v52  ;;  %2068 = vmatpush1.bf16.msra.mxu0 %v3776_v54  ;;  %v3824_v54 = vld [vmem:[#allocation2 + $0x168] ss:$16 sps:$4 sm:$0xff]  }
  0xa9   :  { %2181 = vmatpush1.bf16.msra.mxu1 %v3779_v56  ;;  %2069 = vmatprep.subr.bf16.mxu0 %v3784_v57  ;;  %v3827_v56 = vld [vmem:[#allocation2 + $0x368] ss:$16 sps:$4 sm:$0xff]   ;;  %v3832_v57 = vld [vmem:[#allocation2 + $0x14c] ss:$16 sps:$4 sm:$0xff]  }
  0xaa   :  { %2182 = vmatprep.subr.bf16.mxu1 %v3787_v60  ;;  %1901 = vmatprep.mubr.bf16.mxu0 %v4263_v61  ;;  %v3835_v60 = vld [vmem:[#allocation2 + $0x34c] ss:$16 sps:$4 sm:$0xff]  }
  0xab   :  { %2014 = vmatprep.mubr.bf16.mxu1 %v3996_v4 }
  0xac   :  { %2070 = vmatpush1.bf16.msra.mxu0 %v3782_v0  ;;  %v3830_v0 = vld [vmem:[#allocation2 + $0x148] ss:$16 sps:$4 sm:$0xff]  }
  0xad   :  { %2183 = vmatpush1.bf16.msra.mxu1 %v3785_v2  ;;  %2071 = vmatprep.subr.bf16.mxu0 %v3794_v3  ;;  %v3833_v2 = vld [vmem:[#allocation2 + $0x348] ss:$16 sps:$4 sm:$0xff]  }
  0xae   :  { %2184 = vmatprep.subr.bf16.mxu1 %v3797_v5  ;;  %v4323_v3 = vld [vmem:[%s4938_s0 + $0x19c] ss:$28 sps:$4 sm:$0xff]  }
  0xaf   :  { %1902 = vmatmul.mubr.bf16.gmra.mxu0 %v4273_v8  ;;  %v3842_v5 = vld [vmem:[#allocation2 + $0x12c] ss:$16 sps:$4 sm:$0xff]  }
  0xb0   :  { %3349 = vmatmul.mubr.msk.bf16.gmra.mxu1 %vm1578_vm0, %v4278_v9  ;;  %2072 = vmatpush2.bf16.msra.mxu0 %v3792_v10  ;;  %v4331_v10 = vld [vmem:[%s4938_s0 + $0x198] ss:$28 sps:$4 sm:$0xff]  }
  0xb1   :  { %2185 = vmatpush2.bf16.msra.mxu1 %v3795_v11  ;;  %2073 = vmatprep.subr.bf16.mxu0 %v3800_v13  ;;  %v4336_v11 = vld [vmem:[%s4938_s0 + $0x1a0] ss:$28 sps:$4 sm:$0xff]  }
  0xb2   :  { %2186 = vmatprep.subr.bf16.mxu1 %v3803_v14  ;;  %1911 = vmatprep.mubr.bf16.mxu0 %v4283_v16  ;;  %v3845_v13 = vld [vmem:[#allocation2 + $0x32c] ss:$16 sps:$4 sm:$0xff]   ;;  %v3840_v14 = vld [vmem:[#allocation2 + $0x128] ss:$16 sps:$4 sm:$0xff]  }
  0xb3   :  { %2024 = vmatprep.mubr.bf16.mxu1 %v3996_v4 }
  0xb4   :  { %2074 = vmatpush2.bf16.msra.mxu0 %v3798_v17  ;;  %v3843_v17 = vld [vmem:[#allocation2 + $0x328] ss:$16 sps:$4 sm:$0xff]  }
  0xb5   :  { %2187 = vmatpush2.bf16.msra.mxu1 %v3801_v19  ;;  %2075 = vmatprep.subr.bf16.mxu0 %v3810_v20  ;;  %v3848_v19 = vld [vmem:[#allocation2 + $0x10c] ss:$16 sps:$4 sm:$0xff]  }
  0xb6   :  { %2188 = vmatprep.subr.bf16.mxu1 %v3813_v21  ;;  %v3851_v20 = vld [vmem:[#allocation2 + $0x30c] ss:$16 sps:$4 sm:$0xff]   ;;  %v3846_v21 = vld [vmem:[#allocation2 + $0x108] ss:$16 sps:$4 sm:$0xff]  }
  0xb7   :  { %1912 = vmatmul.mubr.bf16.gmra.mxu0 %v4293_v22 }
  0xb8   :  { %3350 = vmatmul.mubr.msk.bf16.gmra.mxu1 %vm1578_vm0, %v4298_v24  ;;  %2076 = vmatpush2.bf16.msra.mxu0 %v3808_v25  ;;  %v3849_v25 = vld [vmem:[#allocation2 + $0x308] ss:$16 sps:$4 sm:$0xff]  }
  0xb9   :  { %2189 = vmatpush2.bf16.msra.mxu1 %v3811_v27  ;;  %2077 = vmatprep.subr.bf16.mxu0 %v3816_v28  ;;  %v3854_v27 = vld [vmem:[#allocation2 + $0x4ec] ss:$16 sps:$4 sm:$0xff]  }
  0xba   :  { %2190 = vmatprep.subr.bf16.mxu1 %v3819_v32  ;;  %1921 = vmatprep.mubr.bf16.mxu0 %v4303_v37  ;;  %v3857_v28 = vld [vmem:[#allocation2 + $0x60c] ss:$16 sps:$4 sm:$0xff]   ;;  %v3935_v32 = vld [vmem:[%s4938_s0 + $0x4] ss:$28 sps:$4 sm:$0xff]  }
  0xbb   :  { %2034 = vmatprep.mubr.bf16.mxu1 %v3996_v4 }
  0xbc   :  { %2078 = vmatpush2.bf16.msra.mxu0 %v3814_v35  ;;  %v3936_v35 = vld [vmem:[%s4938_s0 + $0xc] ss:$28 sps:$4 sm:$0xff]  }
  0xbd   :  { %2191 = vmatpush2.bf16.msra.mxu1 %v3817_v36  ;;  %2079 = vmatprep.subr.bf16.mxu0 %v3826_v42  ;;  %v3852_v36 = vld [vmem:[#allocation2 + $0x4e8] ss:$16 sps:$4 sm:$0xff]  }
  0xbe   :  { %2192 = vmatprep.subr.bf16.mxu1 %v3829_v44  ;;  %v3855_v42 = vld [vmem:[#allocation2 + $0x608] ss:$16 sps:$4 sm:$0xff]   ;;  %v3860_v44 = vld [vmem:[#allocation2 + $0x4cc] ss:$16 sps:$4 sm:$0xff]  }
  0xbf   :  { %1922 = vmatmul.mubr.bf16.gmra.mxu0 %v4311_v46 }
  0xc0   :  { %3351 = vmatmul.mubr.msk.bf16.gmra.mxu1 %vm1578_vm0, %v4316_v48  ;;  %2080 = vmatpush2.bf16.msra.mxu0 %v3824_v54  ;;  %v3937_v54 = vld [vmem:[%s4938_s0] ss:$28 sps:$4 sm:$0xff]  }
  0xc1   :  { %2193 = vmatpush2.bf16.msra.mxu1 %v3827_v56  ;;  %2081 = vmatprep.subr.bf16.mxu0 %v3832_v57  ;;  %v3938_v56 = vld [vmem:[%s4938_s0 + $0x8] ss:$28 sps:$4 sm:$0xff]  }
  0xc2   :  { %2194 = vmatprep.subr.bf16.mxu1 %v3835_v60  ;;  %1931 = vmatprep.mubr.bf16.mxu0 %v4323_v3  ;;  %v3858_v57 = vld [vmem:[#allocation2 + $0x4c8] ss:$16 sps:$4 sm:$0xff]  }
  0xc3   :  { %2044 = vmatprep.mubr.bf16.mxu1 %v3996_v4  ;;  %v3939_v60 = vld [vmem:[%s4938_s0 + $0x3c] ss:$28 sps:$4 sm:$0xff]  }
  0xc4   :  { %2082 = vmatpush2.bf16.msra.mxu0 %v3830_v0  ;;  %v3863_v0 = vld [vmem:[#allocation2 + $0x4ac] ss:$16 sps:$4 sm:$0xff]  }
  0xc5   :  { %2195 = vmatpush2.bf16.msra.mxu1 %v3833_v2  ;;  %2083 = vmatprep.subr.bf16.mxu0 %v3842_v5  ;;  %v3940_v2 = vld [vmem:[%s4938_s0 + $0x44] ss:$28 sps:$4 sm:$0xff]   ;;  %v3861_v5 = vld [vmem:[#allocation2 + $0x4a8] ss:$16 sps:$4 sm:$0xff]  }
  0xc6   :  { %2196 = vmatprep.subr.bf16.mxu1 %v3845_v13  ;;  %v3866_v13 = vld [vmem:[#allocation2 + $0x48c] ss:$16 sps:$4 sm:$0xff]  }
  0xc7   :  { %1932 = vmatmul.mubr.bf16.gmra.mxu0 %v4331_v10 }
  0xc8   :  { %3352 = vmatmul.mubr.msk.bf16.gmra.mxu1 %vm1578_vm0, %v4336_v11  ;;  %2084 = vmatpush2.bf16.msra.mxu0 %v3840_v14  ;;  %v3941_v14 = vld [vmem:[%s4938_s0 + $0x38] ss:$28 sps:$4 sm:$0xff]  }
  0xc9   :  { %2197 = vmatpush2.bf16.msra.mxu1 %v3843_v17  ;;  %2085 = vmatprep.subr.bf16.mxu0 %v3848_v19  ;;  %v3942_v17 = vld [vmem:[%s4938_s0 + $0x40] ss:$28 sps:$4 sm:$0xff]   ;;  %v3864_v19 = vld [vmem:[#allocation2 + $0x488] ss:$16 sps:$4 sm:$0xff]  }
  0xca   :  { %2198 = vmatprep.subr.bf16.mxu1 %v3851_v20  ;;  %2087 = vmatprep.mubr.bf16.mxu0 %v3935_v32  ;;  %v3943_v20 = vld [vmem:[%s4938_s0 + $0x74] ss:$28 sps:$4 sm:$0xff]  }
  0xcb   :  { %2200 = vmatprep.mubr.bf16.mxu1 %v3936_v35  ;;  %v3945_v32 = vld [vmem:[%s4938_s0 + $0x70] ss:$28 sps:$4 sm:$0xff]   ;;  %v3946_v35 = vld [vmem:[%s4938_s0 + $0x78] ss:$28 sps:$4 sm:$0xff]  }
  0xcc   :  { %2086 = vmatpush2.bf16.msra.mxu0 %v3846_v21  ;;  %v3944_v21 = vld [vmem:[%s4938_s0 + $0x7c] ss:$28 sps:$4 sm:$0xff]  }
  0xcd   :  { %2199 = vmatpush2.bf16.msra.mxu1 %v3849_v25  ;;  %2281 = vmatprep.subr.bf16.mxu0 %v3854_v27  ;;  %v3869_v25 = vld [vmem:[#allocation2 + $0x46c] ss:$16 sps:$4 sm:$0xff]   ;;  %v3867_v27 = vld [vmem:[#allocation2 + $0x468] ss:$16 sps:$4 sm:$0xff]  }
  0xce   :  { %2408 = vmatprep.subr.bf16.mxu1 %v3857_v28  ;;  %v3872_v28 = vld [vmem:[#allocation2 + $0x44c] ss:$16 sps:$4 sm:$0xff]  }
  0xcf   :  { %2088 = vmatmul.mubr.bf16.vlgmr.msra.gmra.mxu0 %v3937_v54  ;;  %v3875_v54 = vld [vmem:[#allocation2 + $0x42c] ss:$16 sps:$4 sm:$0xff]  }
  0xd0   :  { %2201 = vmatmul.mubr.bf16.vlgmr.msra.gmra.mxu1 %v3938_v56  ;;  %2282 = vmatpush1.bf16.msra.mxu0 %v3852_v36  ;;  %v3870_v36 = vld [vmem:[#allocation2 + $0x448] ss:$16 sps:$4 sm:$0xff]  }
  0xd1   :  { %2409 = vmatpush1.bf16.msra.mxu1 %v3855_v42  ;;  %2283 = vmatprep.subr.bf16.mxu0 %v3860_v44  ;;  %v3947_v42 = vld [vmem:[%s4938_s0 + $0xac] ss:$28 sps:$4 sm:$0xff]   ;;  %v3948_v44 = vld [vmem:[%s4938_s0 + $0xb4] ss:$28 sps:$4 sm:$0xff]  }
  0xd2   :  { %2097 = vmatprep.mubr.bf16.mxu0 %v3939_v60  ;;  %2210 = vmatprep.mubr.bf16.mxu1 %v3940_v2  ;;  %v3873_v56 = vld [vmem:[#allocation2 + $0x428] ss:$16 sps:$4 sm:$0xff]  }
  0xd3   :  { %v3876_v60 = vld [vmem:[#allocation2 + $0x408] ss:$16 sps:$4 sm:$0xff]  }
  0xd4   :  { %2284 = vmatpush1.bf16.msra.mxu0 %v3858_v57  ;;  %v3878_v57 = vld [vmem:[#allocation2 + $0x40c] ss:$16 sps:$4 sm:$0xff]   ;;  %v3879_v2 = vld [vmem:[#allocation2 + $0x5e8] ss:$16 sps:$4 sm:$0xff]  }
  0xd5   :  { %2285 = vmatprep.subr.bf16.mxu0 %v3863_v0  ;;  %v3881_v0 = vld [vmem:[#allocation2 + $0x5ec] ss:$16 sps:$4 sm:$0xff]  }
  0xd7   :  { %2098 = vmatmul.mubr.bf16.gmra.mxu0 %v3941_v14  ;;  %v3902_v14 = vld [vmem:[#allocation2 + $0x50c] ss:$16 sps:$4 sm:$0xff]  }
  0xd8   :  { %2211 = vmatmul.mubr.bf16.gmra.mxu1 %v3942_v17  ;;  %2286 = vmatpush1.bf16.msra.mxu0 %v3861_v5  ;;  %v3884_v5 = vld [vmem:[#allocation2 + $0x5cc] ss:$16 sps:$4 sm:$0xff]  }
  0xd9   :  { %2107 = vmatprep.mubr.bf16.mxu0 %v3943_v20  ;;  %2287 = vmatprep.subr.bf16.mxu0 %v3866_v13 }
  0xda   :  { %2220 = vmatprep.mubr.bf16.mxu1 %v3944_v21 }
  0xdc   :  { %2288 = vmatpush1.bf16.msra.mxu0 %v3864_v19  ;;  %v3905_v19 = vld [vmem:[%s4941_s3 + $0x70] sm:$0xff]  }
  0xdd   :  { %2289 = vmatprep.subr.bf16.mxu0 %v3869_v25 }
  0xdf   :  { %2108 = vmatmul.mubr.bf16.gmra.mxu0 %v3945_v32  ;;  %v3906_v32 = vld [vmem:[%s4941_s3 + $0x30] sm:$0xff]  }
  0xe0   :  { %2221 = vmatmul.mubr.bf16.gmra.mxu1 %v3946_v35  ;;  %2290 = vmatpush1.bf16.msra.mxu0 %v3867_v27 }
  0xe1   :  { %2117 = vmatprep.mubr.bf16.mxu0 %v3947_v42  ;;  %2291 = vmatprep.subr.bf16.mxu0 %v3872_v28 }
  0xe2   :  { %2230 = vmatprep.mubr.bf16.mxu1 %v3948_v44 }
  0xe4   :  { %2292 = vmatpush1.bf16.msra.mxu0 %v3870_v36 }
  0xe5   :  { %2293 = vmatprep.subr.bf16.mxu0 %v3875_v54 }
  0xe7   :  { %2118 = vmatmul.mubr.bf16.gmra.mxu0 %v4078_v29  ;;  %v3882_v29 = vld [vmem:[#allocation2 + $0x5c8] ss:$16 sps:$4 sm:$0xff]  }
  0xe8   :  { %2231 = vmatmul.mubr.bf16.gmra.mxu1 %v4083_v30  ;;  %2294 = vmatpush1.bf16.msra.mxu0 %v3873_v56  ;;  %v3887_v30 = vld [vmem:[#allocation2 + $0x5ac] ss:$16 sps:$4 sm:$0xff]  }
  0xe9   :  { %2127 = vmatprep.mubr.bf16.mxu0 %v4088_v33  ;;  %2295 = vmatprep.subr.bf16.mxu0 %v3878_v57  ;;  %v3885_v33 = vld [vmem:[#allocation2 + $0x5a8] ss:$16 sps:$4 sm:$0xff]   ;;  %v3909_v57 = vld [vmem:[%s4941_s3 + $0x60] sm:$0xff]  }
  0xea   :  { %2240 = vmatprep.mubr.bf16.mxu1 %v4093_v34  ;;  %v3890_v34 = vld [vmem:[#allocation2 + $0x58c] ss:$16 sps:$4 sm:$0xff]  }
  0xeb   :  { %v3908_v56 = vld [vmem:[%s4941_s3 + $0x28] sm:$0xff]  }
  0xec   :  { %2296 = vmatpush1.bf16.msra.mxu0 %v3876_v60 }
  0xed   :  { %2297 = vmatprep.subr.bf16.mxu0 %v3881_v0 }
  0xef   :  { %2128 = vmatmul.mubr.bf16.gmra.mxu0 %v4102_v38  ;;  %v3888_v38 = vld [vmem:[#allocation2 + $0x588] ss:$16 sps:$4 sm:$0xff]  }
  0xf0   :  { %2241 = vmatmul.mubr.bf16.gmra.mxu1 %v4107_v39  ;;  %2298 = vmatpush2.bf16.msra.mxu0 %v3879_v2  ;;  %v3893_v39 = vld [vmem:[#allocation2 + $0x56c] ss:$16 sps:$4 sm:$0xff]  }
  0xf1   :  { %2137 = vmatprep.mubr.bf16.mxu0 %v4112_v41  ;;  %2299 = vmatprep.subr.bf16.mxu0 %v3884_v5  ;;  %v3891_v41 = vld [vmem:[#allocation2 + $0x568] ss:$16 sps:$4 sm:$0xff]  }
  0xf2   :  { %2250 = vmatprep.mubr.bf16.mxu1 %v4117_v43  ;;  %v3896_v43 = vld [vmem:[#allocation2 + $0x54c] ss:$16 sps:$4 sm:$0xff]  }
  0xf4   :  { %2300 = vmatpush2.bf16.msra.mxu0 %v3882_v29 }
  0xf5   :  { %2301 = vmatprep.subr.bf16.mxu0 %v3887_v30  ;;  %v3910_v30 = vld [vmem:[%s4941_s3 + $0x20] sm:$0xff]  }
  0xf7   :  { %2138 = vmatmul.mubr.bf16.gmra.mxu0 %v4126_v45  ;;  %v3894_v45 = vld [vmem:[#allocation2 + $0x548] ss:$16 sps:$4 sm:$0xff]  }
  0xf8   :  { %2251 = vmatmul.mubr.bf16.gmra.mxu1 %v4131_v47  ;;  %2302 = vmatpush2.bf16.msra.mxu0 %v3885_v33  ;;  %v298_v47 = vlaneseq }
  0xf9   :  { %2147 = vmatprep.mubr.bf16.mxu0 %v4136_v49  ;;  %2303 = vmatprep.subr.bf16.mxu0 %v3890_v34  ;;  %v3899_v49 = vld [vmem:[#allocation2 + $0x52c] ss:$16 sps:$4 sm:$0xff]  }
  0xfa   :  { %2260 = vmatprep.mubr.bf16.mxu1 %v4141_v51  ;;  %v3897_v51 = vld [vmem:[#allocation2 + $0x528] ss:$16 sps:$4 sm:$0xff]   ;;  %v4401_v13 = vshrl.u32 %v298_v47, 7 }
  0xfc   :  { %2304 = vmatpush2.bf16.msra.mxu0 %v3888_v38  ;;  %4948 = vst [vmem:[#allocation8_spill] sm:$0xff] %v4401_v13 }
  0xfd   :  { %2305 = vmatprep.subr.bf16.mxu0 %v3893_v39 }
  0xff   :  { %2148 = vmatmul.mubr.bf16.gmra.mxu0 %v4150_v53  ;;  %v3900_v53 = vld [vmem:[#allocation2 + $0x508] ss:$16 sps:$4 sm:$0xff]  }
 0x100   :  { %2261 = vmatmul.mubr.bf16.gmra.mxu1 %v4155_v55  ;;  %2306 = vmatpush2.bf16.msra.mxu0 %v3891_v41  ;;  %v300_v55 = vsub.s32 0, %v4401_v13 }
 0x101   :  { %2157 = vmatprep.mubr.bf16.mxu0 %v4160_v58  ;;  %2307 = vmatprep.subr.bf16.mxu0 %v3896_v43  ;;  %v4411_v58 = vld [vmem:[%s4940_s2] sm:$0xf]  ;;  %v3912_v43 = vld [vmem:[%s4941_s3 + $0x18] sm:$0xff]  }
 0x102   :  { %2270 = vmatprep.mubr.bf16.mxu1 %v4165_v59  ;;  %4949 = vst [vmem:[#allocation9_spill] sm:$0xff] %v4411_v58  ;;  %v3903_v59 = vld [vmem:[%s4941_s3 + $0x78] sm:$0xff]  }
 0x104   :  { %2308 = vmatpush2.bf16.msra.mxu0 %v3894_v45  ;;  %v3913_v45 = vld [vmem:[%s4941_s3 + $0x50] sm:$0xff]  }
 0x105   :  { %2309 = vmatprep.subr.bf16.mxu0 %v3899_v49 }
 0x107   :  { %2158 = vmatmul.mubr.bf16.gmra.mxu0 %v4174_v62  ;;  %v304_v62 = vsub.s32 1, %v4401_v13  ;;  %v3933_v13 = vld [vmem:[%s4941_s3 + $0xc0] sm:$0xff]  }
 0x108   :  { %2271 = vmatmul.mubr.bf16.gmra.mxu1 %v4179_v63  ;;  %2310 = vmatpush2.bf16.msra.mxu0 %v3897_v51  ;;  %v4418_v63 = vrot.slane %v4411_v58, %v300_v55  ;;  %v3914_v55 = vld [vmem:[%s4941_s3 + $0x10] sm:$0xff]  }
 0x109   :  { %2313 = vmatprep.mubr.bf16.mxu0 %v4184_v1  ;;  %2311 = vmatprep.subr.bf16.mxu0 %v3902_v14  ;;  %v3904_v1 = vld [vmem:[%s4941_s3 + $0x38] sm:$0xff]   ;;  %v4424_v17 = vrot.slane %v4411_v58, %v304_v62 }
 0x10a   :  { %2426 = vmatprep.mubr.bf16.mxu1 %v3996_v4  ;;  %v3920_v62 = vld [vmem:[%s4941_s3 + $0xb8] sm:$0xff]  }
 0x10c   :  { %2312 = vmatpush2.bf16.msra.mxu0 %v3900_v53 }
 0x10d   :  { %3394 = vmatprep.subr.bf16.mxu0 %v3903_v59 }
 0x10f   :  { %v1637_v20 = vpop.f32.mrf.mxu0  ;;  %2314 = vmatmul.mubr.bf16.vlgmr.msra.gmra.mxu0 %v4193_v6 }
 0x110   :  { %v1750_v21 = vpop.f32.mrf.mxu1  ;;  %3353 = vmatmul.mubr.msk.bf16.vlgmr.msra.gmra.mxu1 %vm1578_vm0, %v4198_v7  ;;  %v1638_v25 = vadd.f32 %v1637_v20, %v4418_v63  ;;  %2323 = vmatprep.mubr.bf16.mxu0 %v4203_v12  ;;  %v3907_v7 = vld [vmem:[%s4941_s3 + $0x68] sm:$0xff]  }
 0x111   :  { %2436 = vmatprep.mubr.bf16.mxu1 %v3996_v4  ;;  %v1639_v27 = vpop.f32.mrf.mxu0  ;;  %3395 = vmatpush3.bf16.msra.mxu0 %v3904_v1 }
 0x112   :  { %v1752_v28 = vpop.f32.mrf.mxu1  ;;  %v4438_v35 = vadd.f32 %v1750_v21, %v1638_v25  ;;  %v1640_v6 = vadd.f32 %v1639_v27, %v4424_v17  ;;  %3396 = vmatprep.subr.bf16.mxu0 %v3905_v19  ;;  %v3916_v27 = vld [vmem:[%s4941_s3 + $0x8] sm:$0xff]  }
 0x113   :  { %v4444_v36 = vpop.f32.mrf.mxu0 }
 0x114   :  { %v4446_v12 = vpop.f32.mrf.mxu1  ;;  %v4448_v42 = vadd.f32 %v1752_v28, %v1640_v6  ;;  %v3917_v28 = vld [vmem:[%s4941_s3 + $0x40] sm:$0xff]  }
 0x115   :  { %v4450_v44 = vpop.f32.mrf.mxu0  ;;  %3397 = vmatpush3.bf16.msra.mxu0 %v3906_v32 }
 0x116   :  { %v4452_v54 = vpop.f32.mrf.mxu1  ;;  %3398 = vmatprep.subr.bf16.mxu0 %v3907_v7 }
 0x117   :  { %v1647_v60 = vpop.f32.mrf.mxu0  ;;  %2324 = vmatmul.mubr.bf16.gmra.mxu0 %v4211_v15 }
 0x118   :  { %v1760_v0 = vpop.f32.mrf.mxu1  ;;  %3354 = vmatmul.mubr.msk.bf16.gmra.mxu1 %vm1578_vm0, %v4218_v18  ;;  %v1648_v2 = vadd.f32 %v1647_v60, %v4418_v63  ;;  %2333 = vmatprep.mubr.bf16.mxu0 %v4223_v23  ;;  %v3911_v18 = vld [vmem:[%s4941_s3 + $0x58] sm:$0xff]   ;;  %v3918_v60 = vld [vmem:[%s4941_s3] sm:$0xff]  }
 0x119   :  { %2446 = vmatprep.mubr.bf16.mxu1 %v3996_v4  ;;  %v1649_v5 = vpop.f32.mrf.mxu0  ;;  %3399 = vmatpush3.bf16.msra.mxu0 %v3908_v56 }
 0x11a   :  { %v1762_v29 = vpop.f32.mrf.mxu1  ;;  %v4469_v33 = vadd.f32 %v1760_v0, %v1648_v2  ;;  %v1650_v15 = vadd.f32 %v1649_v5, %v4424_v17  ;;  %3400 = vmatprep.subr.bf16.mxu0 %v3909_v57 }
 0x11b   :  { %v4475_v34 = vpop.f32.mrf.mxu0 }
 0x11c   :  { %v4477_v23 = vpop.f32.mrf.mxu1  ;;  %v4479_v38 = vadd.f32 %v1762_v29, %v1650_v15 }
 0x11d   :  { %v4481_v39 = vpop.f32.mrf.mxu0  ;;  %3401 = vmatpush3.bf16.msra.mxu0 %v3910_v30 }
 0x11e   :  { %v4483_v41 = vpop.f32.mrf.mxu1  ;;  %3402 = vmatprep.subr.bf16.mxu0 %v3911_v18 }
 0x11f   :  { %v1657_v47 = vpop.f32.mrf.mxu0  ;;  %2334 = vmatmul.mubr.bf16.gmra.mxu0 %v4231_v26 }
 0x120   :  { %v1770_v49 = vpop.f32.mrf.mxu1  ;;  %3355 = vmatmul.mubr.msk.bf16.gmra.mxu1 %vm1578_vm0, %v4238_v31  ;;  %v1658_v51 = vadd.f32 %v1657_v47, %v4418_v63  ;;  %2343 = vmatprep.mubr.bf16.mxu0 %v4243_v40  ;;  %v3915_v31 = vld [vmem:[%s4941_s3 + $0x48] sm:$0xff]   ;;  %v3919_v40 = vld [vmem:[%s4941_s3 + $0xf8] sm:$0xff]  }
 0x121   :  { %2456 = vmatprep.mubr.bf16.mxu1 %v3996_v4  ;;  %v1659_v14 = vpop.f32.mrf.mxu0  ;;  %3403 = vmatpush3.bf16.msra.mxu0 %v3912_v43 }
 0x122   :  { %v1772_v53 = vpop.f32.mrf.mxu1  ;;  %v4500_v59 = vadd.f32 %v1770_v49, %v1658_v51  ;;  %v1660_v26 = vadd.f32 %v1659_v14, %v4424_v17  ;;  %3404 = vmatprep.subr.bf16.mxu0 %v3913_v45  ;;  %3458 = vmatprep.subr.bf16.mxu1 %v3919_v40 }
 0x123   :  { %v4512_v1 = vpop.f32.mrf.mxu0  ;;  %3459 = vmatpush3.bf16.msra.mxu1 %v3920_v62 }
 0x124   :  { %v4514_v19 = vpop.f32.mrf.mxu1  ;;  %v4516_v20 = vadd.f32 %v1772_v53, %v1660_v26  ;;  %v3923_v53 = vld [vmem:[%s4941_s3 + $0xe8] sm:$0xff]  }
 0x125   :  { %v4518_v21 = vpop.f32.mrf.mxu0  ;;  %3405 = vmatpush3.bf16.msra.mxu0 %v3914_v55 }
 0x126   :  { %v4520_v25 = vpop.f32.mrf.mxu1  ;;  %3406 = vmatprep.subr.bf16.mxu0 %v3915_v31 }
 0x127   :  { %v1667_v32 = vpop.f32.mrf.mxu0  ;;  %2344 = vmatmul.mubr.bf16.gmra.mxu0 %v4253_v50 }
 0x128   :  { %v1780_v6 = vpop.f32.mrf.mxu1  ;;  %3356 = vmatmul.mubr.msk.bf16.gmra.mxu1 %vm1578_vm0, %v4258_v52  ;;  %v1668_v7 = vadd.f32 %v1667_v32, %v4418_v63  ;;  %2353 = vmatprep.mubr.bf16.mxu0 %v4263_v61  ;;  %v3921_v52 = vld [vmem:[%s4941_s3 + $0xf0] sm:$0xff]  }
 0x129   :  { %2466 = vmatprep.mubr.bf16.mxu1 %v3996_v4  ;;  %v1669_v56 = vpop.f32.mrf.mxu0  ;;  %3407 = vmatpush3.bf16.msra.mxu0 %v3916_v27  ;;  %v3922_v61 = vld [vmem:[%s4941_s3 + $0xb0] sm:$0xff]  }
 0x12a   :  { %v1782_v57 = vpop.f32.mrf.mxu1  ;;  %v4537_v0 = vadd.f32 %v1780_v6, %v1668_v7  ;;  %v1670_v50 = vadd.f32 %v1669_v56, %v4424_v17  ;;  %3408 = vmatprep.subr.bf16.mxu0 %v3917_v28  ;;  %3460 = vmatprep.subr.bf16.mxu1 %v3921_v52  ;;  %v3925_v56 = vld [vmem:[%s4941_s3 + $0xe0] sm:$0xff]  }
 0x12b   :  { %v4546_v2 = vpop.f32.mrf.mxu0  ;;  %3461 = vmatpush3.bf16.msra.mxu1 %v3922_v61 }
 0x12c   :  { %v4548_v5 = vpop.f32.mrf.mxu1  ;;  %v4550_v29 = vadd.f32 %v1782_v57, %v1670_v50  ;;  %3462 = vmatprep.subr.bf16.mxu1 %v3923_v53 }
 0x12d   :  { %v4552_v30 = vpop.f32.mrf.mxu0  ;;  %3409 = vmatpush3.bf16.msra.mxu0 %v3918_v60 }
 0x12e   :  { %v4554_v15 = vpop.f32.mrf.mxu1 }
 0x12f   :  { %v1677_v18 = vpop.f32.mrf.mxu0  ;;  %2354 = vmatmul.mubr.bf16.gmra.mxu0 %v4273_v8  ;;  %v3924_v8 = vld [vmem:[%s4941_s3 + $0xa8] sm:$0xff]  }
 0x130   :  { %v1790_v43 = vpop.f32.mrf.mxu1  ;;  %3357 = vmatmul.mubr.msk.bf16.gmra.mxu1 %vm1578_vm0, %v4278_v9  ;;  %v1678_v45 = vadd.f32 %v1677_v18, %v4418_v63  ;;  %2363 = vmatprep.mubr.bf16.mxu0 %v4283_v16 }
 0x131   :  { %2476 = vmatprep.mubr.bf16.mxu1 %v3996_v4  ;;  %v1679_v47 = vpop.f32.mrf.mxu0  ;;  %3463 = vmatpush3.bf16.msra.mxu1 %v3924_v8 }
 0x132   :  { %v1792_v49 = vpop.f32.mrf.mxu1  ;;  %v4562_v51 = vadd.f32 %v1790_v43, %v1678_v45  ;;  %v1680_v14 = vadd.f32 %v1679_v47, %v4424_v17  ;;  %3464 = vmatprep.subr.bf16.mxu1 %v3925_v56 }
 0x133   :  { %v4571_v9 = vpop.f32.mrf.mxu0 }
 0x134   :  { %v4573_v55 = vpop.f32.mrf.mxu1  ;;  %v4575_v16 = vadd.f32 %v1792_v49, %v1680_v14  ;;  %v3927_v14 = vld [vmem:[%s4941_s3 + $0xd8] sm:$0xff]  }
 0x135   :  { %v4577_v26 = vpop.f32.mrf.mxu0 }
 0x136   :  { %v4579_v31 = vpop.f32.mrf.mxu1 }
 0x137   :  { %v1687_v40 = vpop.f32.mrf.mxu0  ;;  %2364 = vmatmul.mubr.bf16.gmra.mxu0 %v4293_v22  ;;  %v3926_v22 = vld [vmem:[%s4941_s3 + $0xa0] sm:$0xff]  }
 0x138   :  { %v1800_v62 = vpop.f32.mrf.mxu1  ;;  %3358 = vmatmul.mubr.msk.bf16.gmra.mxu1 %vm1578_vm0, %v4298_v24  ;;  %v1688_v27 = vadd.f32 %v1687_v40, %v4418_v63  ;;  %2373 = vmatprep.mubr.bf16.mxu0 %v4303_v37 }
 0x139   :  { %2486 = vmatprep.mubr.bf16.mxu1 %v3996_v4  ;;  %v1689_v28 = vpop.f32.mrf.mxu0  ;;  %3465 = vmatpush3.bf16.msra.mxu1 %v3926_v22  ;;  %v3929_v22 = vld [vmem:[%s4941_s3 + $0xd0] sm:$0xff]  }
 0x13a   :  { %v1802_v32 = vpop.f32.mrf.mxu1  ;;  %v4587_v6 = vadd.f32 %v1800_v62, %v1688_v27  ;;  %v1690_v7 = vadd.f32 %v1689_v28, %v4424_v17  ;;  %3466 = vmatprep.subr.bf16.mxu1 %v3927_v14 }
 0x13b   :  { %v4596_v24 = vpop.f32.mrf.mxu0 }
 0x13c   :  { %v4598_v57 = vpop.f32.mrf.mxu1  ;;  %v4600_v37 = vadd.f32 %v1802_v32, %v1690_v7 }
 0x13d   :  { %v4602_v60 = vpop.f32.mrf.mxu0 }
 0x13e   :  { %v4604_v50 = vpop.f32.mrf.mxu1 }
 0x13f   :  { %v1697_v52 = vpop.f32.mrf.mxu0  ;;  %2374 = vmatmul.mubr.bf16.gmra.mxu0 %v4311_v46  ;;  %v3928_v46 = vld [vmem:[%s4941_s3 + $0x98] sm:$0xff]  }
 0x140   :  { %v1810_v61 = vpop.f32.mrf.mxu1  ;;  %3359 = vmatmul.mubr.msk.bf16.gmra.mxu1 %vm1578_vm0, %v4316_v48  ;;  %v1698_v18 = vadd.f32 %v1697_v52, %v4418_v63  ;;  %2383 = vmatprep.mubr.bf16.mxu0 %v4323_v3  ;;  %v3930_v52 = vld [vmem:[%s4941_s3 + $0x90] sm:$0xff]  }
 0x141   :  { %2496 = vmatprep.mubr.bf16.mxu1 %v3996_v4  ;;  %v1699_v43 = vpop.f32.mrf.mxu0  ;;  %3467 = vmatpush3.bf16.msra.mxu1 %v3928_v46  ;;  %v1644_v46 = vadd.f32 %v4450_v44, %v4424_v17  ;;  %v3932_v44 = vld [vmem:[%s4941_s3 + $0x88] sm:$0xff]  }
 0x142   :  { %v1812_v45 = vpop.f32.mrf.mxu1  ;;  %v4612_v47 = vadd.f32 %v1810_v61, %v1698_v18  ;;  %v1700_v49 = vadd.f32 %v1699_v43, %v4424_v17  ;;  %3468 = vmatprep.subr.bf16.mxu1 %v3929_v22 }
 0x143   :  { %v4621_v48 = vpop.f32.mrf.mxu0 }
 0x144   :  { %v4623_v53 = vpop.f32.mrf.mxu1  ;;  %v4625_v3 = vadd.f32 %v1812_v45, %v1700_v49  ;;  %v1642_v45 = vadd.f32 %v4444_v36, %v4418_v63  ;;  %v3931_v36 = vld [vmem:[%s4941_s3 + $0xc8] sm:$0xff]  }
 0x145   :  { %v4627_v4 = vpop.f32.mrf.mxu0  ;;  %3469 = vmatpush3.bf16.msra.mxu1 %v3930_v52  ;;  %v1757_v52 = vadd.f32 %v4452_v54, %v1644_v46 }
 0x146   :  { %v4629_v8 = vpop.f32.mrf.mxu1  ;;  %3470 = vmatprep.subr.bf16.mxu1 %v3931_v36 }
 0x147   :  { %v1707_v40 = vpop.f32.mrf.mxu0  ;;  %2384 = vmatmul.mubr.bf16.gmra.mxu0 %v4331_v10 }
 0x148   :  { %v1820_v62 = vpop.f32.mrf.mxu1  ;;  %3360 = vmatmul.mubr.msk.bf16.gmra.mxu1 %vm1578_vm0, %v4336_v11  ;;  %v1708_v27 = vadd.f32 %v1707_v40, %v4418_v63 }
 0x149   :  { %v1709_v28 = vpop.f32.mrf.mxu0  ;;  %3471 = vmatpush3.bf16.msra.mxu1 %v3932_v44 }
 0x14a   :  { %v1822_v32 = vpop.f32.mrf.mxu1  ;;  %v4635_v7 = vadd.f32 %v1820_v62, %v1708_v27  ;;  %v1710_v56 = vadd.f32 %v1709_v28, %v4424_v17  ;;  %v1755_v27 = vadd.f32 %v4446_v12, %v1642_v45  ;;  %v1652_v12 = vadd.f32 %v4475_v34, %v4418_v63  ;;  %3472 = vmatprep.subr.bf16.mxu1 %v3933_v13 }
 0x14b   :  { %v4644_v10 = vpop.f32.mrf.mxu0  ;;  %v1664_v13 = vadd.f32 %v4518_v21, %v4424_v17 }
 0x14c   :  { %4950 = vst [vmem:[#allocation10_spill] sm:$0xff] %v4635_v7  ;;  %v4646_v61 = vpop.f32.mrf.mxu1  ;;  %v4648_v11 = vadd.f32 %v1822_v32, %v1710_v56  ;;  %v1765_v34 = vadd.f32 %v4477_v23, %v1652_v12 }
 0x14d   :  { %4951 = vst [vmem:[#allocation11_spill] sm:$0xff] %v4646_v61  ;;  %v4650_v18 = vpop.f32.mrf.mxu0 }
 0x14e   :  { %4952 = vst [vmem:[#allocation12_spill] sm:$0xff] %v4648_v11  ;;  %v4652_v43 = vpop.f32.mrf.mxu1 }
 0x14f   :  { %4953 = vst [vmem:[#allocation13_spill] sm:$0xff] %v4652_v43  ;;  %v1863_v49 = vpop.f32.mrf.mxu0 }
 0x150   :  { %v1976_v14 = vpop.f32.mrf.mxu1  ;;  %v1864_v32 = vadd.f32 %v1863_v49, %v4438_v35 }
 0x151   :  { %v1865_v40 = vpop.f32.mrf.mxu0 }
 0x152   :  { %v1978_v62 = vpop.f32.mrf.mxu1  ;;  %v1866_v28 = vadd.f32 %v1865_v40, %v4448_v42  ;;  %v1977_v49 = vadd.f32 %v1976_v14, %v1864_v32  ;;  %v1654_v40 = vadd.f32 %v4481_v39, %v4424_v17 }
 0x153   :  { %v1867_v56 = vpop.f32.mrf.mxu0 }
 0x154   :  { %v1980_v22 = vpop.f32.mrf.mxu1  ;;  %v1868_v58 = vadd.f32 %v1867_v56, %v1755_v27  ;;  %v1979_v42 = vadd.f32 %v1978_v62, %v1866_v28  ;;  %v3934_v62 = vld [vmem:[%s4941_s3 + $0x80] sm:$0xff]   ;;  %v2507_v28 = vmax.f32 %v1977_v49, 0.0 }
 0x155   :  { %v1869_v43 = vpop.f32.mrf.mxu0  ;;  %3473 = vmatpush3.bf16.msra.mxu1 %v3934_v62  ;;  %v1777_v62 = vadd.f32 %v4520_v25, %v1664_v13 }
 0x156   :  { %v1982_v7 = vpop.f32.mrf.mxu1  ;;  %v1981_v35 = vadd.f32 %v1980_v22, %v1868_v58  ;;  %v1870_v45 = vadd.f32 %v1869_v43, %v1757_v52  ;;  %v2508_v58 = vmax.f32 %v1979_v42, 0.0  ;;  %v1767_v22 = vadd.f32 %v4483_v41, %v1654_v40 }
 0x157   :  { %v1873_v54 = vpop.f32.mrf.mxu0 }
 0x158   :  { %v1986_v46 = vpop.f32.mrf.mxu1  ;;  %v1983_v27 = vadd.f32 %v1982_v7, %v1870_v45  ;;  %v2511_v56 = vmax.f32 %v1981_v35, 0.0  ;;  %v1874_v39 = vadd.f32 %v1873_v54, %v4469_v33 }
 0x159   :  { %v1875_v11 = vpop.f32.mrf.mxu0 }
 0x15a   :  { %v1988_v61 = vpop.f32.mrf.mxu1  ;;  %v2512_v43 = vmax.f32 %v1983_v27, 0.0  ;;  %v1876_v14 = vadd.f32 %v1875_v11, %v4479_v38  ;;  %v2571_v23 = vpack.c.bf16 %v2511_v56, %v2507_v28  ;;  %v1662_v38 = vadd.f32 %v4512_v1, %v4418_v63 }
 0x15b   :  { %v1877_v7 = vpop.f32.mrf.mxu0  ;;  %v1987_v45 = vadd.f32 %v1986_v46, %v1874_v39 }
 0x15c   :  { %v1990_v32 = vpop.f32.mrf.mxu1  ;;  %v1878_v52 = vadd.f32 %v1877_v7, %v1765_v34  ;;  %v2572_v36 = vpack.c.bf16 %v2512_v43, %v2508_v58  ;;  %v1989_v11 = vadd.f32 %v1988_v61, %v1876_v14  ;;  %v1775_v56 = vadd.f32 %v4514_v19, %v1662_v38 }
 0x15d   :  { %v1879_v44 = vpop.f32.mrf.mxu0  ;;  %v2515_v61 = vmax.f32 %v1987_v45, 0.0 }
 0x15e   :  { %v1992_v12 = vpop.f32.mrf.mxu1  ;;  %v1991_v42 = vadd.f32 %v1990_v32, %v1878_v52  ;;  %v1880_v35 = vadd.f32 %v1879_v44, %v1767_v22  ;;  %2898 = vmatprep.mubr.bf16.mxu0 %v2572_v36  ;;  %v2516_v34 = vmax.f32 %v1989_v11, 0.0  ;;  %v1672_v22 = vadd.f32 %v4546_v2, %v4418_v63 }
 0x15f   :  { %v1883_v33 = vpop.f32.mrf.mxu0  ;;  %2899 = vmatmul.mubr.bf16.vlgmr.msra.gmra.mxu0 %v2571_v23 }
 0x160   :  { %v1996_v49 = vpop.f32.mrf.mxu1  ;;  %v1993_v41 = vadd.f32 %v1992_v12, %v1880_v35  ;;  %v2519_v54 = vmax.f32 %v1991_v42, 0.0  ;;  %v1884_v43 = vadd.f32 %v1883_v33, %v4500_v59  ;;  %v1674_v59 = vadd.f32 %v4552_v30, %v4424_v17 }
 0x161   :  { %v1885_v40 = vpop.f32.mrf.mxu0  ;;  %v1785_v42 = vadd.f32 %v4548_v5, %v1672_v22 }
 0x162   :  { %v1998_v27 = vpop.f32.mrf.mxu1  ;;  %v2520_v58 = vmax.f32 %v1993_v41, 0.0  ;;  %v1886_v1 = vadd.f32 %v1885_v40, %v4516_v20  ;;  %v2575_v21 = vpack.c.bf16 %v2519_v54, %v2515_v61  ;;  %v1997_v20 = vadd.f32 %v1996_v49, %v1884_v43 }
 0x163   :  { %v1887_v46 = vpop.f32.mrf.mxu0  ;;  %v1787_v54 = vadd.f32 %v4554_v15, %v1674_v59 }
 0x164   :  { %v2000_v14 = vpop.f32.mrf.mxu1  ;;  %v1888_v28 = vadd.f32 %v1887_v46, %v1775_v56  ;;  %v2576_v39 = vpack.c.bf16 %v2520_v58, %v2516_v34  ;;  %v1999_v19 = vadd.f32 %v1998_v27, %v1886_v1  ;;  %v2523_v33 = vmax.f32 %v1997_v20, 0.0 }
 0x165   :  { %v1889_v7 = vpop.f32.mrf.mxu0  ;;  %v1682_v58 = vadd.f32 %v4571_v9, %v4418_v63 }
 0x166   :  { %v2002_v32 = vpop.f32.mrf.mxu1  ;;  %v2001_v52 = vadd.f32 %v2000_v14, %v1888_v28  ;;  %v1890_v36 = vadd.f32 %v1889_v7, %v1777_v62  ;;  %2906 = vmatprep.mubr.bf16.mxu0 %v2576_v39  ;;  %v2524_v35 = vmax.f32 %v1999_v19, 0.0 }
 0x167   :  { %v1893_v23 = vpop.f32.mrf.mxu0  ;;  %2907 = vmatmul.mubr.bf16.gmra.mxu0 %v2575_v21  ;;  %v1795_v39 = vadd.f32 %v4573_v55, %v1682_v58 }
 0x168   :  { %v2006_v44 = vpop.f32.mrf.mxu1  ;;  %v2003_v25 = vadd.f32 %v2002_v32, %v1890_v36  ;;  %v2527_v12 = vmax.f32 %v2001_v52, 0.0  ;;  %v1894_v13 = vadd.f32 %v1893_v23, %v4537_v0  ;;  %v1684_v0 = vadd.f32 %v4577_v26, %v4424_v17 }
 0x169   :  { %v1895_v38 = vpop.f32.mrf.mxu0 }
 0x16a   :  { %v2008_v11 = vpop.f32.mrf.mxu1  ;;  %v2528_v45 = vmax.f32 %v2003_v25, 0.0  ;;  %v1896_v2 = vadd.f32 %v1895_v38, %v4550_v29  ;;  %v2579_v30 = vpack.c.bf16 %v2527_v12, %v2523_v33  ;;  %v2007_v29 = vadd.f32 %v2006_v44, %v1894_v13 }
 0x16b   :  { %v1897_v49 = vpop.f32.mrf.mxu0  ;;  %v1797_v36 = vadd.f32 %v4579_v31, %v1684_v0  ;;  %v1692_v25 = vadd.f32 %v4596_v24, %v4418_v63 }
 0x16c   :  { %v2010_v41 = vpop.f32.mrf.mxu1  ;;  %v1898_v40 = vadd.f32 %v1897_v49, %v1785_v42  ;;  %v2580_v27 = vpack.c.bf16 %v2528_v45, %v2524_v35  ;;  %v2009_v5 = vadd.f32 %v2008_v11, %v1896_v2  ;;  %v2531_v32 = vmax.f32 %v2007_v29, 0.0 }
 0x16d   :  { %v1899_v56 = vpop.f32.mrf.mxu0  ;;  %v1805_v33 = vadd.f32 %v4598_v57, %v1692_v25 }
 0x16e   :  { %v2012_v34 = vpop.f32.mrf.mxu1  ;;  %v2011_v1 = vadd.f32 %v2010_v41, %v1898_v40  ;;  %v1900_v61 = vadd.f32 %v1899_v56, %v1787_v54  ;;  %2914 = vmatprep.mubr.bf16.mxu0 %v2580_v27  ;;  %v2532_v21 = vmax.f32 %v2009_v5, 0.0 }
 0x16f   :  { %v1903_v43 = vpop.f32.mrf.mxu0  ;;  %2915 = vmatmul.mubr.bf16.gmra.mxu0 %v2579_v30 }
 0x170   :  { %v2016_v46 = vpop.f32.mrf.mxu1  ;;  %v2013_v15 = vadd.f32 %v2012_v34, %v1900_v61  ;;  %v2535_v14 = vmax.f32 %v2011_v1, 0.0  ;;  %v1904_v22 = vadd.f32 %v1903_v43, %v4562_v51  ;;  %v1694_v51 = vadd.f32 %v4602_v60, %v4424_v17 }
 0x171   :  { %v1905_v62 = vpop.f32.mrf.mxu0  ;;  %v1702_v1 = vadd.f32 %v4621_v48, %v4418_v63 }
 0x172   :  { %v2018_v28 = vpop.f32.mrf.mxu1  ;;  %v2536_v7 = vmax.f32 %v2013_v15, 0.0  ;;  %v1906_v9 = vadd.f32 %v1905_v62, %v4575_v16  ;;  %v2583_v26 = vpack.c.bf16 %v2535_v14, %v2531_v32  ;;  %v2017_v16 = vadd.f32 %v2016_v46, %v1904_v22 }
 0x173   :  { %v1907_v19 = vpop.f32.mrf.mxu0  ;;  %v1807_v30 = vadd.f32 %v4604_v50, %v1694_v51  ;;  %v1815_v62 = vadd.f32 %v4623_v53, %v1702_v1 }
 0x174   :  { %v2020_v52 = vpop.f32.mrf.mxu1  ;;  %v1908_v20 = vadd.f32 %v1907_v19, %v1795_v39  ;;  %v2584_v23 = vpack.c.bf16 %v2536_v7, %v2532_v21  ;;  %v2019_v55 = vadd.f32 %v2018_v28, %v1906_v9  ;;  %v2539_v41 = vmax.f32 %v2017_v16, 0.0 }
 0x175   :  { %v1909_v44 = vpop.f32.mrf.mxu0 }
 0x176   :  { %v2022_v59 = vpop.f32.mrf.mxu1  ;;  %v2021_v12 = vadd.f32 %v2020_v52, %v1908_v20  ;;  %v1910_v38 = vadd.f32 %v1909_v44, %v1797_v36  ;;  %2922 = vmatprep.mubr.bf16.mxu0 %v2584_v23  ;;  %v2540_v13 = vmax.f32 %v2019_v55, 0.0  ;;  %v1712_v23 = vadd.f32 %v4644_v10, %v4418_v63  ;;  %v4954_v55 = vld [vmem:[#allocation8_spill] sm:$0xff]  ;;  %v4955_v63 = vld [vmem:[#allocation11_spill] sm:$0xff] }
 0x177   :  { %v1913_v11 = vpop.f32.mrf.mxu0  ;;  %2923 = vmatmul.mubr.bf16.gmra.mxu0 %v2583_v26 }
 0x178   :  { %v2026_v42 = vpop.f32.mrf.mxu1  ;;  %v2023_v31 = vadd.f32 %v2022_v59, %v1910_v38  ;;  %v2543_v35 = vmax.f32 %v2021_v12, 0.0  ;;  %v1914_v54 = vadd.f32 %v1913_v11, %v4587_v6  ;;  %v1704_v6 = vadd.f32 %v4627_v4, %v4424_v17 }
 0x179   :  { %v1915_v45 = vpop.f32.mrf.mxu0  ;;  %v308_v12 = vsub.s32 2, %v4954_v55  ;;  %v1825_v10 = vadd.f32 %v4955_v63, %v1712_v23 }
 0x17a   :  { %v2028_v2 = vpop.f32.mrf.mxu1  ;;  %v2544_v49 = vmax.f32 %v2023_v31, 0.0  ;;  %v1916_v24 = vadd.f32 %v1915_v45, %v4600_v37  ;;  %v2587_v60 = vpack.c.bf16 %v2543_v35, %v2539_v41  ;;  %v2027_v37 = vadd.f32 %v2026_v42, %v1914_v54  ;;  %v4956_v35 = vld [vmem:[#allocation12_spill] sm:$0xff] }
 0x17b   :  { %v1917_v40 = vpop.f32.mrf.mxu0  ;;  %v1817_v22 = vadd.f32 %v4629_v8, %v1704_v6  ;;  %v312_v42 = vsub.s32 3, %v4954_v55 }
 0x17c   :  { %v2030_v27 = vpop.f32.mrf.mxu1  ;;  %v2588_v56 = vpack.c.bf16 %v2544_v49, %v2540_v13  ;;  %v1918_v34 = vadd.f32 %v1917_v40, %v1805_v33  ;;  %v2029_v57 = vadd.f32 %v2028_v2, %v1916_v24  ;;  %v2547_v21 = vmax.f32 %v2027_v37, 0.0  ;;  %v4957_v33 = vld [vmem:[#allocation10_spill] sm:$0xff]  ;;  %v4959_v40 = vld [vmem:[#allocation9_spill] sm:$0xff] }
 0x17d   :  { %v1919_v58 = vpop.f32.mrf.mxu0  ;;  %v4736_v1 = vrot.slane %v4959_v40, %v312_v42 }
 0x17e   :  { %v2032_v5 = vpop.f32.mrf.mxu1  ;;  %v2031_v61 = vadd.f32 %v2030_v27, %v1918_v34  ;;  %v1920_v29 = vadd.f32 %v1919_v58, %v1807_v30  ;;  %2930 = vmatprep.mubr.bf16.mxu0 %v2588_v56  ;;  %v2548_v28 = vmax.f32 %v2029_v57, 0.0  ;;  %v4733_v27 = vrot.slane %v4959_v40, %v308_v12 }
 0x17f   :  { %v1923_v43 = vpop.f32.mrf.mxu0  ;;  %2931 = vmatmul.mubr.bf16.gmra.mxu0 %v2587_v60 }
 0x180   :  { %v2036_v46 = vpop.f32.mrf.mxu1  ;;  %v2033_v50 = vadd.f32 %v2032_v5, %v1920_v29  ;;  %v2551_v0 = vmax.f32 %v2031_v61, 0.0  ;;  %v1924_v7 = vadd.f32 %v1923_v43, %v4612_v47  ;;  %v1714_v47 = vadd.f32 %v4650_v18, %v4424_v17  ;;  %v4958_v17 = vld [vmem:[#allocation13_spill] sm:$0xff] }
 0x181   :  { %v1925_v15 = vpop.f32.mrf.mxu0 }
 0x182   :  { %v2038_v14 = vpop.f32.mrf.mxu1  ;;  %v2552_v39 = vmax.f32 %v2033_v50, 0.0  ;;  %v1926_v48 = vadd.f32 %v1925_v15, %v4625_v3  ;;  %v2591_v4 = vpack.c.bf16 %v2551_v0, %v2547_v21  ;;  %v2037_v3 = vadd.f32 %v2036_v46, %v1924_v7 }
 0x183   :  { %v1927_v9 = vpop.f32.mrf.mxu0  ;;  %v1827_v18 = vadd.f32 %v4958_v17, %v1714_v47 }
 0x184   :  { %v2040_v32 = vpop.f32.mrf.mxu1  ;;  %v2592_v19 = vpack.c.bf16 %v2552_v39, %v2548_v28  ;;  %v1928_v52 = vadd.f32 %v1927_v9, %v1815_v62  ;;  %v2039_v53 = vadd.f32 %v2038_v14, %v1926_v48  ;;  %v2555_v2 = vmax.f32 %v2037_v3, 0.0 }
 0x185   :  { %v1929_v36 = vpop.f32.mrf.mxu0 }
 0x186   :  { %v2042_v20 = vpop.f32.mrf.mxu1  ;;  %v2041_v26 = vadd.f32 %v2040_v32, %v1928_v52  ;;  %v1930_v44 = vadd.f32 %v1929_v36, %v1817_v22  ;;  %2938 = vmatprep.mubr.bf16.mxu0 %v2592_v19  ;;  %v2556_v51 = vmax.f32 %v2039_v53, 0.0 }
 0x187   :  { %v1933_v59 = vpop.f32.mrf.mxu0  ;;  %2939 = vmatmul.mubr.bf16.gmra.mxu0 %v2591_v4 }
 0x188   :  { %v2046_v25 = vpop.f32.mrf.mxu1  ;;  %v2043_v8 = vadd.f32 %v2042_v20, %v1930_v44  ;;  %v2559_v38 = vmax.f32 %v2041_v26, 0.0  ;;  %v1934_v13 = vadd.f32 %v1933_v59, %v4957_v33 }
 0x189   :  { %v1935_v16 = vpop.f32.mrf.mxu0 }
 0x18a   :  { %v2048_v11 = vpop.f32.mrf.mxu1  ;;  %v2560_v31 = vmax.f32 %v2043_v8, 0.0  ;;  %v1936_v45 = vadd.f32 %v1935_v16, %v4956_v35  ;;  %v2595_v30 = vpack.c.bf16 %v2559_v38, %v2555_v2  ;;  %v2047_v57 = vadd.f32 %v2046_v25, %v1934_v13 }
 0x18b   :  { %v1937_v49 = vpop.f32.mrf.mxu0 }
 0x18c   :  { %v2050_v24 = vpop.f32.mrf.mxu1  ;;  %v2596_v41 = vpack.c.bf16 %v2560_v31, %v2556_v51  ;;  %v1938_v54 = vadd.f32 %v1937_v49, %v1825_v10  ;;  %v2049_v60 = vadd.f32 %v2048_v11, %v1936_v45  ;;  %v2563_v28 = vmax.f32 %v2047_v57, 0.0 }
 0x18d   :  { %v1939_v56 = vpop.f32.mrf.mxu0 }
 0x18e   :  { %v2052_v34 = vpop.f32.mrf.mxu1  ;;  %v2051_v58 = vadd.f32 %v2050_v24, %v1938_v54  ;;  %v1940_v5 = vadd.f32 %v1939_v56, %v1827_v18  ;;  %2946 = vmatprep.mubr.bf16.mxu0 %v2596_v41  ;;  %v2564_v0 = vmax.f32 %v2049_v60, 0.0 }
 0x18f   :  { %v2089_v61 = vpop.f32.mrf.mxu0  ;;  %2947 = vmatmul.mubr.bf16.gmra.mxu0 %v2595_v30 }
 0x190   :  { %v2202_v29 = vpop.f32.mrf.mxu1  ;;  %v2053_v37 = vadd.f32 %v2052_v34, %v1940_v5  ;;  %v2090_v43 = vadd.f32 %v2089_v61, %v4733_v27  ;;  %v2567_v46 = vmax.f32 %v2051_v58, 0.0 }
 0x191   :  { %v2091_v6 = vpop.f32.mrf.mxu0 }
 0x192   :  { %v2204_v50 = vpop.f32.mrf.mxu1  ;;  %v2568_v15 = vmax.f32 %v2053_v37, 0.0  ;;  %v4739_v14 = vadd.f32 %v2202_v29, %v2090_v43  ;;  %v2092_v62 = vadd.f32 %v2091_v6, %v4736_v1  ;;  %v2599_v9 = vpack.c.bf16 %v2567_v46, %v2563_v28 }
 0x193   :  { %v4742_v39 = vpop.f32.mrf.mxu0 }
 0x194   :  { %v4744_v48 = vpop.f32.mrf.mxu1  ;;  %v2600_v21 = vpack.c.bf16 %v2568_v15, %v2564_v0  ;;  %v4746_v7 = vadd.f32 %v2204_v50, %v2092_v62 }
 0x195   :  { %v4748_v32 = vpop.f32.mrf.mxu0 }
 0x196   :  { %v4750_v22 = vpop.f32.mrf.mxu1  ;;  %2954 = vmatprep.mubr.bf16.mxu0 %v2600_v21 }
 0x197   :  { %v2099_v19 = vpop.f32.mrf.mxu0  ;;  %2955 = vmatmul.mubr.bf16.gmra.mxu0 %v2599_v9 }
 0x198   :  { %v2212_v52 = vpop.f32.mrf.mxu1  ;;  %v2100_v4 = vadd.f32 %v2099_v19, %v4733_v27 }
 0x199   :  { %v2101_v36 = vpop.f32.mrf.mxu0 }
 0x19a   :  { %v2214_v20 = vpop.f32.mrf.mxu1  ;;  %v4753_v23 = vadd.f32 %v2212_v52, %v2100_v4  ;;  %v2102_v53 = vadd.f32 %v2101_v36, %v4736_v1 }
 0x19b   :  { %v4756_v26 = vpop.f32.mrf.mxu0 }
 0x19c   :  { %v4758_v44 = vpop.f32.mrf.mxu1  ;;  %v4760_v3 = vadd.f32 %v2214_v20, %v2102_v53 }
 0x19d   :  { %v4762_v59 = vpop.f32.mrf.mxu0 }
 0x19e   :  { %v4764_v25 = vpop.f32.mrf.mxu1 }
 0x19f   :  { %v2109_v47 = vpop.f32.mrf.mxu0 }
 0x1a0   :  { %v2222_v8 = vpop.f32.mrf.mxu1  ;;  %v2110_v55 = vadd.f32 %v2109_v47, %v4733_v27 }
 0x1a1   :  { %v2111_v12 = vpop.f32.mrf.mxu0 }
 0x1a2   :  { %v2224_v38 = vpop.f32.mrf.mxu1  ;;  %v4767_v16 = vadd.f32 %v2222_v8, %v2110_v55  ;;  %v2112_v11 = vadd.f32 %v2111_v12, %v4736_v1 }
 0x1a3   :  { %v4770_v42 = vpop.f32.mrf.mxu0 }
 0x1a4   :  { %v4772_v63 = vpop.f32.mrf.mxu1  ;;  %v4774_v10 = vadd.f32 %v2224_v38, %v2112_v11 }
 0x1a5   :  { %v4776_v51 = vpop.f32.mrf.mxu0 }
 0x1a6   :  { %v4778_v31 = vpop.f32.mrf.mxu1 }
 0x1a7   :  { %v2119_v35 = vpop.f32.mrf.mxu0 }
 0x1a8   :  { %v2232_v45 = vpop.f32.mrf.mxu1  ;;  %v2120_v2 = vadd.f32 %v2119_v35, %v4733_v27 }
 0x1a9   :  { %v2121_v33 = vpop.f32.mrf.mxu0 }
 0x1aa   :  { %v2234_v13 = vpop.f32.mrf.mxu1  ;;  %v4781_v49 = vadd.f32 %v2232_v45, %v2120_v2  ;;  %v2122_v24 = vadd.f32 %v2121_v33, %v4736_v1 }
 0x1ab   :  { %v4784_v17 = vpop.f32.mrf.mxu0 }
 0x1ac   :  { %v4786_v18 = vpop.f32.mrf.mxu1  ;;  %v4788_v41 = vadd.f32 %v2234_v13, %v2122_v24 }
 0x1ad   :  { %v4790_v54 = vpop.f32.mrf.mxu0 }
 0x1ae   :  { %v4792_v40 = vpop.f32.mrf.mxu1 }
 0x1af   :  { %v2129_v30 = vpop.f32.mrf.mxu0 }
 0x1b0   :  { %v2242_v56 = vpop.f32.mrf.mxu1  ;;  %v2130_v34 = vadd.f32 %v2129_v30, %v4733_v27 }
 0x1b1   :  { %v2131_v60 = vpop.f32.mrf.mxu0 }
 0x1b2   :  { %v2244_v58 = vpop.f32.mrf.mxu1  ;;  %v4795_v5 = vadd.f32 %v2242_v56, %v2130_v34  ;;  %v2132_v57 = vadd.f32 %v2131_v60, %v4736_v1 }
 0x1b3   :  { %v4798_v61 = vpop.f32.mrf.mxu0 }
 0x1b4   :  { %v4800_v29 = vpop.f32.mrf.mxu1  ;;  %v4802_v37 = vadd.f32 %v2244_v58, %v2132_v57 }
 0x1b5   :  { %v4804_v43 = vpop.f32.mrf.mxu0 }
 0x1b6   :  { %v4806_v46 = vpop.f32.mrf.mxu1 }
 0x1b7   :  { %v2139_v6 = vpop.f32.mrf.mxu0 }
 0x1b8   :  { %v2252_v50 = vpop.f32.mrf.mxu1  ;;  %v2140_v0 = vadd.f32 %v2139_v6, %v4733_v27 }
 0x1b9   :  { %v2141_v15 = vpop.f32.mrf.mxu0 }
 0x1ba   :  { %v2254_v62 = vpop.f32.mrf.mxu1  ;;  %v4809_v28 = vadd.f32 %v2252_v50, %v2140_v0  ;;  %v2142_v21 = vadd.f32 %v2141_v15, %v4736_v1 }
 0x1bb   :  { %v4812_v9 = vpop.f32.mrf.mxu0 }
 0x1bc   :  { %v4814_v19 = vpop.f32.mrf.mxu1  ;;  %v4816_v52 = vadd.f32 %v2254_v62, %v2142_v21  ;;  %v2094_v62 = vadd.f32 %v4742_v39, %v4733_v27 }
 0x1bd   :  { %v4818_v4 = vpop.f32.mrf.mxu0 }
 0x1be   :  { %v4820_v36 = vpop.f32.mrf.mxu1 }
 0x1bf   :  { %v2149_v20 = vpop.f32.mrf.mxu0 }
 0x1c0   :  { %v2262_v53 = vpop.f32.mrf.mxu1  ;;  %v2150_v47 = vadd.f32 %v2149_v20, %v4733_v27 }
 0x1c1   :  { %v2151_v8 = vpop.f32.mrf.mxu0 }
 0x1c2   :  { %v2264_v55 = vpop.f32.mrf.mxu1  ;;  %v4823_v12 = vadd.f32 %v2262_v53, %v2150_v47  ;;  %v2152_v38 = vadd.f32 %v2151_v8, %v4736_v1  ;;  %v2096_v53 = vadd.f32 %v4748_v32, %v4736_v1 }
 0x1c3   :  { %v4826_v11 = vpop.f32.mrf.mxu0 }
 0x1c4   :  { %v4828_v35 = vpop.f32.mrf.mxu1  ;;  %v4830_v45 = vadd.f32 %v2264_v55, %v2152_v38  ;;  %v2207_v55 = vadd.f32 %v4744_v48, %v2094_v62 }
 0x1c5   :  { %v4832_v2 = vpop.f32.mrf.mxu0 }
 0x1c6   :  { %v4834_v33 = vpop.f32.mrf.mxu1 }
 0x1c7   :  { %v2159_v13 = vpop.f32.mrf.mxu0 }
 0x1c8   :  { %v2272_v24 = vpop.f32.mrf.mxu1  ;;  %v2160_v30 = vadd.f32 %v2159_v13, %v4733_v27 }
 0x1c9   :  { %v2161_v56 = vpop.f32.mrf.mxu0 }
 0x1ca   :  { %v2274_v34 = vpop.f32.mrf.mxu1  ;;  %v4837_v60 = vadd.f32 %v2272_v24, %v2160_v30  ;;  %v2162_v58 = vadd.f32 %v2161_v56, %v4736_v1  ;;  %v2209_v56 = vadd.f32 %v4750_v22, %v2096_v53 }
 0x1cb   :  { %v4840_v57 = vpop.f32.mrf.mxu0 }
 0x1cc   :  { %4960 = vst [vmem:[#allocation8_spill] sm:$0xff] %v4837_v60  ;;  %v4842_v6 = vpop.f32.mrf.mxu1  ;;  %v4844_v50 = vadd.f32 %v2274_v34, %v2162_v58 }
 0x1cd   :  { %4961 = vst [vmem:[#allocation11_spill] sm:$0xff] %v4842_v6  ;;  %v4846_v0 = vpop.f32.mrf.mxu0 }
 0x1ce   :  { %4962 = vst [vmem:[#allocation12_spill] sm:$0xff] %v4844_v50  ;;  %4963 = vst [vmem:[#allocation10_spill] sm:$0xff] %v4846_v0  ;;  %v4848_v15 = vpop.f32.mrf.mxu1 }
 0x1cf   :  { %4964 = vst [vmem:[#allocation13_spill] sm:$0xff] %v4848_v15  ;;  %v2315_v21 = vpop.f32.mrf.mxu0  ;;  %v2104_v15 = vadd.f32 %v4756_v26, %v4733_v27 }
 0x1d0   :  { %v2428_v20 = vpop.f32.mrf.mxu1  ;;  %v2316_v13 = vadd.f32 %v2315_v21, %v4739_v14 }
 0x1d1   :  { %v2317_v47 = vpop.f32.mrf.mxu0  ;;  %v2217_v22 = vadd.f32 %v4758_v44, %v2104_v15 }
 0x1d2   :  { %v2430_v8 = vpop.f32.mrf.mxu1  ;;  %v2318_v38 = vadd.f32 %v2317_v47, %v4746_v7  ;;  %v2429_v6 = vadd.f32 %v2428_v20, %v2316_v13  ;;  %v2106_v7 = vadd.f32 %v4762_v59, %v4736_v1 }
 0x1d3   :  { %v2319_v24 = vpop.f32.mrf.mxu0 }
 0x1d4   :  { %v2432_v30 = vpop.f32.mrf.mxu1  ;;  %v2320_v34 = vadd.f32 %v2319_v24, %v2207_v55  ;;  %v2431_v60 = vadd.f32 %v2430_v8, %v2318_v38  ;;  %v2509_v26 = vmax.f32 %v2429_v6, 0.0  ;;  %v2219_v13 = vadd.f32 %v4764_v25, %v2106_v7 }
 0x1d5   :  { %v2321_v58 = vpop.f32.mrf.mxu0 }
 0x1d6   :  { %v2434_v39 = vpop.f32.mrf.mxu1  ;;  %v2433_v32 = vadd.f32 %v2432_v30, %v2320_v34  ;;  %v2322_v50 = vadd.f32 %v2321_v58, %v2209_v56  ;;  %v2510_v53 = vmax.f32 %v2431_v60, 0.0  ;;  %v2114_v58 = vadd.f32 %v4770_v42, %v4733_v27 }
 0x1d7   :  { %v2325_v0 = vpop.f32.mrf.mxu0 }
 0x1d8   :  { %v2438_v48 = vpop.f32.mrf.mxu1  ;;  %v2435_v14 = vadd.f32 %v2434_v39, %v2322_v50  ;;  %v2513_v62 = vmax.f32 %v2433_v32, 0.0  ;;  %v2326_v8 = vadd.f32 %v2325_v0, %v4753_v23  ;;  %v2116_v23 = vadd.f32 %v4776_v51, %v4736_v1 }
 0x1d9   :  { %v2327_v21 = vpop.f32.mrf.mxu0 }
 0x1da   :  { %v2440_v47 = vpop.f32.mrf.mxu1  ;;  %v2514_v55 = vmax.f32 %v2435_v14, 0.0  ;;  %v2328_v24 = vadd.f32 %v2327_v21, %v4760_v3  ;;  %v2573_v59 = vpack.c.bf16 %v2513_v62, %v2509_v26  ;;  %v2439_v3 = vadd.f32 %v2438_v48, %v2326_v8 }
 0x1db   :  { %v2329_v38 = vpop.f32.mrf.mxu0  ;;  %v2227_v14 = vadd.f32 %v4772_v63, %v2114_v58 }
 0x1dc   :  { %v2442_v20 = vpop.f32.mrf.mxu1  ;;  %v2574_v30 = vpack.c.bf16 %v2514_v55, %v2510_v53  ;;  %v2330_v56 = vadd.f32 %v2329_v38, %v2217_v22  ;;  %v2441_v44 = vadd.f32 %v2440_v47, %v2328_v24  ;;  %v2517_v47 = vmax.f32 %v2439_v3, 0.0 }
 0x1dd   :  { %v2331_v50 = vpop.f32.mrf.mxu0  ;;  %v2229_v55 = vadd.f32 %v4778_v31, %v2116_v23 }
 0x1de   :  { %v2444_v34 = vpop.f32.mrf.mxu1  ;;  %v2443_v60 = vadd.f32 %v2442_v20, %v2330_v56  ;;  %v2332_v15 = vadd.f32 %v2331_v50, %v2219_v13  ;;  %2995 = vmatprep.mubr.bf16.mxu1 %v2574_v30  ;;  %v2518_v62 = vmax.f32 %v2441_v44, 0.0  ;;  %v2124_v20 = vadd.f32 %v4784_v17, %v4733_v27 }
 0x1df   :  { %v2335_v6 = vpop.f32.mrf.mxu0  ;;  %2996 = vmatmul.mubr.bf16.vlgmr.msra.gmra.mxu1 %v2573_v59 }
 0x1e0   :  { %v2448_v39 = vpop.f32.mrf.mxu1  ;;  %v2445_v25 = vadd.f32 %v2444_v34, %v2332_v15  ;;  %v2521_v0 = vmax.f32 %v2443_v60, 0.0  ;;  %v2336_v22 = vadd.f32 %v2335_v6, %v4767_v16  ;;  %v2126_v16 = vadd.f32 %v4790_v54, %v4736_v1 }
 0x1e1   :  { %v2337_v32 = vpop.f32.mrf.mxu0  ;;  %v2237_v44 = vadd.f32 %v4786_v18, %v2124_v20 }
 0x1e2   :  { %v2450_v7 = vpop.f32.mrf.mxu1  ;;  %v2522_v21 = vmax.f32 %v2445_v25, 0.0  ;;  %v2338_v42 = vadd.f32 %v2337_v32, %v4774_v10  ;;  %v2577_v51 = vpack.c.bf16 %v2521_v0, %v2517_v47  ;;  %v2449_v10 = vadd.f32 %v2448_v39, %v2336_v22 }
 0x1e3   :  { %v2339_v48 = vpop.f32.mrf.mxu0  ;;  %v2239_v25 = vadd.f32 %v4792_v40, %v2126_v16  ;;  %v2144_v16 = vadd.f32 %v4812_v9, %v4733_v27 }
 0x1e4   :  { %v2452_v53 = vpop.f32.mrf.mxu1  ;;  %v2578_v24 = vpack.c.bf16 %v2522_v21, %v2518_v62  ;;  %v2340_v26 = vadd.f32 %v2339_v48, %v2227_v14  ;;  %v2451_v63 = vadd.f32 %v2450_v7, %v2338_v42  ;;  %v2525_v3 = vmax.f32 %v2449_v10, 0.0 }
 0x1e5   :  { %v2341_v8 = vpop.f32.mrf.mxu0  ;;  %v2134_v62 = vadd.f32 %v4798_v61, %v4733_v27 }
 0x1e6   :  { %v2454_v38 = vpop.f32.mrf.mxu1  ;;  %v2453_v13 = vadd.f32 %v2452_v53, %v2340_v26  ;;  %v2342_v30 = vadd.f32 %v2341_v8, %v2229_v55  ;;  %3003 = vmatprep.mubr.bf16.mxu1 %v2578_v24  ;;  %v2526_v60 = vmax.f32 %v2451_v63, 0.0 }
 0x1e7   :  { %v2345_v56 = vpop.f32.mrf.mxu0  ;;  %3004 = vmatmul.mubr.bf16.gmra.mxu1 %v2577_v51  ;;  %v2247_v24 = vadd.f32 %v4800_v29, %v2134_v62 }
 0x1e8   :  { %v2458_v59 = vpop.f32.mrf.mxu1  ;;  %v2455_v31 = vadd.f32 %v2454_v38, %v2342_v30  ;;  %v2529_v50 = vmax.f32 %v2453_v13, 0.0  ;;  %v2346_v6 = vadd.f32 %v2345_v56, %v4781_v49  ;;  %v2136_v49 = vadd.f32 %v4804_v43, %v4736_v1 }
 0x1e9   :  { %v2347_v34 = vpop.f32.mrf.mxu0 }
 0x1ea   :  { %v2460_v58 = vpop.f32.mrf.mxu1  ;;  %v2530_v15 = vmax.f32 %v2455_v31, 0.0  ;;  %v2348_v17 = vadd.f32 %v2347_v34, %v4788_v41  ;;  %v2581_v54 = vpack.c.bf16 %v2529_v50, %v2525_v3  ;;  %v2459_v41 = vadd.f32 %v2458_v59, %v2346_v6 }
 0x1eb   :  { %v2349_v39 = vpop.f32.mrf.mxu0  ;;  %v2249_v13 = vadd.f32 %v4806_v46, %v2136_v49 }
 0x1ec   :  { %v2462_v23 = vpop.f32.mrf.mxu1  ;;  %v2582_v0 = vpack.c.bf16 %v2530_v15, %v2526_v60  ;;  %v2350_v32 = vadd.f32 %v2349_v39, %v2237_v44  ;;  %v2461_v18 = vadd.f32 %v2460_v58, %v2348_v17  ;;  %v2533_v8 = vmax.f32 %v2459_v41, 0.0 }
 0x1ed   :  { %v2351_v7 = vpop.f32.mrf.mxu0  ;;  %v2257_v17 = vadd.f32 %v4814_v19, %v2144_v16 }
 0x1ee   :  { %v2464_v14 = vpop.f32.mrf.mxu1  ;;  %v2463_v21 = vadd.f32 %v2462_v23, %v2350_v32  ;;  %v2352_v42 = vadd.f32 %v2351_v7, %v2239_v25  ;;  %3011 = vmatprep.mubr.bf16.mxu1 %v2582_v0  ;;  %v2534_v26 = vmax.f32 %v2461_v18, 0.0  ;;  %v2154_v18 = vadd.f32 %v4826_v11, %v4733_v27 }
 0x1ef   :  { %v2355_v47 = vpop.f32.mrf.mxu0  ;;  %3012 = vmatmul.mubr.bf16.gmra.mxu1 %v2581_v54 }
 0x1f0   :  { %v2468_v22 = vpop.f32.mrf.mxu1  ;;  %v2465_v40 = vadd.f32 %v2464_v14, %v2352_v42  ;;  %v2537_v48 = vmax.f32 %v2463_v21, 0.0  ;;  %v2356_v38 = vadd.f32 %v2355_v47, %v4795_v5  ;;  %v2146_v5 = vadd.f32 %v4818_v4, %v4736_v1 }
 0x1f1   :  { %v2357_v53 = vpop.f32.mrf.mxu0 }
 0x1f2   :  { %v2470_v55 = vpop.f32.mrf.mxu1  ;;  %v2538_v51 = vmax.f32 %v2465_v40, 0.0  ;;  %v2358_v61 = vadd.f32 %v2357_v53, %v4802_v37  ;;  %v2585_v43 = vpack.c.bf16 %v2537_v48, %v2533_v8  ;;  %v2469_v37 = vadd.f32 %v2468_v22, %v2356_v38 }
 0x1f3   :  { %v2359_v20 = vpop.f32.mrf.mxu0  ;;  %v2259_v32 = vadd.f32 %v4820_v36, %v2146_v5  ;;  %v2267_v48 = vadd.f32 %v4828_v35, %v2154_v18 }
 0x1f4   :  { %v2472_v63 = vpop.f32.mrf.mxu1  ;;  %v2586_v30 = vpack.c.bf16 %v2538_v51, %v2534_v26  ;;  %v2360_v10 = vadd.f32 %v2359_v20, %v2247_v24  ;;  %v2471_v29 = vadd.f32 %v2470_v55, %v2358_v61  ;;  %v2541_v39 = vmax.f32 %v2469_v37, 0.0  ;;  %v4966_v37 = vld [vmem:[#allocation11_spill] sm:$0xff] }
 0x1f5   :  { %v2361_v56 = vpop.f32.mrf.mxu0 }
 0x1f6   :  { %v2474_v59 = vpop.f32.mrf.mxu1  ;;  %v2473_v31 = vadd.f32 %v2472_v63, %v2360_v10  ;;  %v2362_v50 = vadd.f32 %v2361_v56, %v2249_v13  ;;  %3019 = vmatprep.mubr.bf16.mxu1 %v2586_v30  ;;  %v2542_v3 = vmax.f32 %v2471_v29, 0.0  ;;  %v2164_v30 = vadd.f32 %v4840_v57, %v4733_v27  ;;  %v4967_v27 = vld [vmem:[#allocation12_spill] sm:$0xff] }
 0x1f7   :  { %v2365_v34 = vpop.f32.mrf.mxu0  ;;  %3020 = vmatmul.mubr.bf16.gmra.mxu1 %v2585_v43 }
 0x1f8   :  { %v2478_v58 = vpop.f32.mrf.mxu1  ;;  %v2475_v46 = vadd.f32 %v2474_v59, %v2362_v50  ;;  %v2545_v44 = vmax.f32 %v2473_v31, 0.0  ;;  %v2366_v23 = vadd.f32 %v2365_v34, %v4809_v28  ;;  %v2156_v28 = vadd.f32 %v4832_v2, %v4736_v1 }
 0x1f9   :  { %v2367_v60 = vpop.f32.mrf.mxu0  ;;  %v2277_v34 = vadd.f32 %v4966_v37, %v2164_v30 }
 0x1fa   :  { %v2480_v15 = vpop.f32.mrf.mxu1  ;;  %v2546_v6 = vmax.f32 %v2475_v46, 0.0  ;;  %v2368_v9 = vadd.f32 %v2367_v60, %v4816_v52  ;;  %v2589_v4 = vpack.c.bf16 %v2545_v44, %v2541_v39  ;;  %v2479_v52 = vadd.f32 %v2478_v58, %v2366_v23  ;;  %v4968_v44 = vld [vmem:[#allocation8_spill] sm:$0xff] }
 0x1fb   :  { %v2369_v25 = vpop.f32.mrf.mxu0  ;;  %v2269_v8 = vadd.f32 %v4834_v33, %v2156_v28 }
 0x1fc   :  { %v2482_v0 = vpop.f32.mrf.mxu1  ;;  %v2590_v54 = vpack.c.bf16 %v2546_v6, %v2542_v3  ;;  %v2370_v7 = vadd.f32 %v2369_v25, %v2257_v17  ;;  %v2481_v19 = vadd.f32 %v2480_v15, %v2368_v9  ;;  %v2549_v24 = vmax.f32 %v2479_v52, 0.0  ;;  %v4969_v3 = vld [vmem:[#allocation13_spill] sm:$0xff] }
 0x1fd   :  { %v2371_v14 = vpop.f32.mrf.mxu0 }
 0x1fe   :  { %v2484_v62 = vpop.f32.mrf.mxu1  ;;  %v2483_v21 = vadd.f32 %v2482_v0, %v2370_v7  ;;  %v2372_v42 = vadd.f32 %v2371_v14, %v2259_v32  ;;  %3027 = vmatprep.mubr.bf16.mxu1 %v2590_v54  ;;  %v2550_v53 = vmax.f32 %v2481_v19, 0.0 }
 0x1ff   :  { %v2375_v41 = vpop.f32.mrf.mxu0  ;;  %3028 = vmatmul.mubr.bf16.gmra.mxu1 %v2589_v4 }
 0x200   :  { %v2488_v47 = vpop.f32.mrf.mxu1  ;;  %v2485_v36 = vadd.f32 %v2484_v62, %v2372_v42  ;;  %v2553_v22 = vmax.f32 %v2483_v21, 0.0  ;;  %v2376_v26 = vadd.f32 %v2375_v41, %v4823_v12  ;;  %v4965_v12 = vld [vmem:[#allocation10_spill] sm:$0xff] }
 0x201   :  { %v2377_v49 = vpop.f32.mrf.mxu0  ;;  %v2166_v16 = vadd.f32 %v4965_v12, %v4736_v1 }
 0x202   :  { %v2490_v40 = vpop.f32.mrf.mxu1  ;;  %v2554_v55 = vmax.f32 %v2485_v36, 0.0  ;;  %v2378_v11 = vadd.f32 %v2377_v49, %v4830_v45  ;;  %v2593_v2 = vpack.c.bf16 %v2553_v22, %v2549_v24  ;;  %v2489_v45 = vadd.f32 %v2488_v47, %v2376_v26 }
 0x203   :  { %v2379_v51 = vpop.f32.mrf.mxu0  ;;  %v2279_v6 = vadd.f32 %v4969_v3, %v2166_v16 }
 0x204   :  { %v2492_v61 = vpop.f32.mrf.mxu1  ;;  %v2594_v38 = vpack.c.bf16 %v2554_v55, %v2550_v53  ;;  %v2380_v20 = vadd.f32 %v2379_v51, %v2267_v48  ;;  %v2491_v35 = vadd.f32 %v2490_v40, %v2378_v11  ;;  %v2557_v46 = vmax.f32 %v2489_v45, 0.0 }
 0x205   :  { %v2381_v63 = vpop.f32.mrf.mxu0 }
 0x206   :  { %v2494_v13 = vpop.f32.mrf.mxu1  ;;  %v2493_v10 = vadd.f32 %v2492_v61, %v2380_v20  ;;  %v2382_v43 = vadd.f32 %v2381_v63, %v2269_v8  ;;  %3035 = vmatprep.mubr.bf16.mxu1 %v2594_v38  ;;  %v2558_v58 = vmax.f32 %v2491_v35, 0.0  ;;  %v4917_v20 = vld [vmem:[%s4942_s4] ss:$0 sm:$0xff]  ;;  %s3997_s4 = smov [#allocation5]  }
 0x207   :  { %v2385_v56 = vpop.f32.mrf.mxu0  ;;  %3036 = vmatmul.mubr.bf16.gmra.mxu1 %v2593_v2  ;;  %s3081_s18 = sshll.u32 %s3997_s4, 4  ;;  %s3082_s18 = int_to_ptr.vmem [resolvable:$true] %s3081_s18 }
 0x208   :  { %v2498_v59 = vpop.f32.mrf.mxu1  ;;  %v2495_v33 = vadd.f32 %v2494_v13, %v2382_v43  ;;  %v2561_v29 = vmax.f32 %v2493_v10, 0.0  ;;  %v2386_v60 = vadd.f32 %v2385_v56, %v4968_v44  ;;  %s3969_s19 = scalar_lea.vmem %s3082_s18, 2048  ;;  %p3974_p6 = scmp.lt.s32.totalorder %s3082_s18, %s3082_s18 }
 0x209   :  { %v2387_v31 = vpop.f32.mrf.mxu0  ;;  %p3970_p5 = scmp.ne.s32.totalorder %s3082_s18, %s3969_s19  ;;  %p3975_p7 = scmp.lt.s32.totalorder %s3969_s19, %s3969_s19 }
 0x20a   :  { %v2500_v50 = vpop.f32.mrf.mxu1  ;;  %v2562_v5 = vmax.f32 %v2495_v33, 0.0  ;;  %v2388_v57 = vadd.f32 %v2387_v31, %v4967_v27  ;;  %v2597_v1 = vpack.c.bf16 %v2561_v29, %v2557_v46  ;;  %v2499_v54 = vadd.f32 %v2498_v59, %v2386_v60 }
 0x20b   :  { %v2389_v15 = vpop.f32.mrf.mxu0  ;;  %p3976_p8 = por %p3975_p7, %p3974_p6 }
 0x20c   :  { %v2502_v17 = vpop.f32.mrf.mxu1  ;;  %v2598_v9 = vpack.c.bf16 %v2562_v5, %v2558_v58  ;;  %v2390_v39 = vadd.f32 %v2389_v15, %v2277_v34  ;;  %v2501_v25 = vadd.f32 %v2500_v50, %v2388_v57  ;;  %v2565_v19 = vmax.f32 %v2499_v54, 0.0 }
 0x20d   :  { %v2391_v23 = vpop.f32.mrf.mxu0  ;;  %p3977_p9 = pnand %p3976_p8, %p3970_p5 }
 0x20e   :  { %v2503_v0 = vadd.f32 %v2502_v17, %v2390_v39  ;;  %v2392_v32 = vadd.f32 %v2391_v23, %v2279_v6  ;;  %3043 = vmatprep.mubr.bf16.mxu1 %v2598_v9  ;;  %v2504_v7 = vpop.f32.mrf.mxu1  ;;  %v2566_v62 = vmax.f32 %v2501_v25, 0.0 }
 0x20f   :  { %3044 = vmatmul.mubr.bf16.gmra.mxu1 %v2597_v1 }
 0x210   :  { %v2505_v4 = vadd.f32 %v2504_v7, %v2392_v32  ;;  %v2569_v14 = vmax.f32 %v2503_v0, 0.0 }
 0x212   :  { %v2570_v18 = vmax.f32 %v2505_v4, 0.0  ;;  %v2601_v42 = vpack.c.bf16 %v2569_v14, %v2565_v19 }
 0x214   :  { %v2602_v21 = vpack.c.bf16 %v2570_v18, %v2566_v62 }
 0x216   :  { %3051 = vmatprep.mubr.bf16.mxu1 %v2602_v21 }
 0x217   :  { %3052 = vmatmul.mubr.bf16.gmra.mxu1 %v2601_v42 }
 0x21f   :  { %v3410_v52 = vpop.f32.mrf.mxu0 }
 0x221   :  { %v3411_v41 = vpop.f32.mrf.mxu0 }
 0x222   :  { %v3412_v38 = vadd.f32 %v3411_v41, %v3410_v52 }
 0x223   :  { %v3413_v47 = vpop.f32.mrf.mxu0 }
 0x224   :  { %v2901_v30 = vadd.f32 %v3412_v38, %v4917_v20 }
 0x225   :  { %v3414_v28 = vpop.f32.mrf.mxu0 }
 0x226   :  { %v3415_v35 = vadd.f32 %v3414_v28, %v3413_v47 }
 0x227   :  { %v3416_v36 = vpop.f32.mrf.mxu0 }
 0x228   :  { %v2904_v12 = vadd.f32 %v3415_v35, %v4917_v20 }
 0x229   :  { %v3417_v22 = vpop.f32.mrf.mxu0 }
 0x22a   :  { %v3418_v16 = vadd.f32 %v3417_v22, %v3416_v36 }
 0x22b   :  { %v3419_v49 = vpop.f32.mrf.mxu0 }
 0x22c   :  { %v2909_v34 = vadd.f32 %v3418_v16, %v4917_v20 }
 0x22d   :  { %v3420_v40 = vpop.f32.mrf.mxu0 }
 0x22e   :  { %v3421_v58 = vadd.f32 %v3420_v40, %v3419_v49 }
 0x22f   :  { %v3422_v48 = vpop.f32.mrf.mxu0 }
 0x230   :  { %v2912_v60 = vadd.f32 %v3421_v58, %v4917_v20 }
 0x231   :  { %v3423_v53 = vpop.f32.mrf.mxu0 }
 0x232   :  { %v3424_v15 = vadd.f32 %v3423_v53, %v3422_v48 }
 0x233   :  { %v3425_v55 = vpop.f32.mrf.mxu0 }
 0x234   :  { %v2917_v1 = vadd.f32 %v3424_v15, %v4917_v20 }
 0x235   :  { %v3426_v11 = vpop.f32.mrf.mxu0 }
 0x236   :  { %v3427_v23 = vadd.f32 %v3426_v11, %v3425_v55 }
 0x237   :  { %v3428_v24 = vpop.f32.mrf.mxu0 }
 0x238   :  { %v2920_v4 = vadd.f32 %v3427_v23, %v4917_v20 }
 0x239   :  { %v3429_v26 = vpop.f32.mrf.mxu0 }
 0x23a   :  { %v3430_v14 = vadd.f32 %v3429_v26, %v3428_v24 }
 0x23b   :  { %v3431_v51 = vpop.f32.mrf.mxu0 }
 0x23c   :  { %v2925_v52 = vadd.f32 %v3430_v14, %v4917_v20 }
 0x23d   :  { %v3432_v61 = vpop.f32.mrf.mxu0 }
 0x23e   :  { %v3433_v41 = vadd.f32 %v3432_v61, %v3431_v51 }
 0x23f   :  { %v3434_v8 = vpop.f32.mrf.mxu0 }
 0x240   :  { %v2928_v40 = vadd.f32 %v3433_v41, %v4917_v20 }
 0x241   :  { %v3435_v2 = vpop.f32.mrf.mxu0 }
 0x242   :  { %v3436_v48 = vadd.f32 %v3435_v2, %v3434_v8 }
 0x243   :  { %v3437_v43 = vpop.f32.mrf.mxu0 }
 0x244   :  { %v2933_v38 = vadd.f32 %v3436_v48, %v4917_v20 }
 0x245   :  { %v3438_v29 = vpop.f32.mrf.mxu0 }
 0x247   :  { %v3440_v27 = vpop.f32.mrf.mxu0 }
 0x249   :  { %v3441_v3 = vpop.f32.mrf.mxu0 }
 0x24b   :  { %v3443_v0 = vpop.f32.mrf.mxu0 }
 0x24d   :  { %v3444_v18 = vpop.f32.mrf.mxu0 }
 0x24f   :  { %v3446_v28 = vpop.f32.mrf.mxu0 }
 0x251   :  { %v3447_v55 = vpop.f32.mrf.mxu0 }
 0x252   :  { %v3448_v58 = vadd.f32 %v3447_v55, %v3446_v28 }
 0x253   :  { %v3449_v61 = vpop.f32.mrf.mxu0 }
 0x255   :  { %v3450_v2 = vpop.f32.mrf.mxu0 }
 0x256   :  { %v3451_v15 = vadd.f32 %v3450_v2, %v3449_v61 }
 0x29f   :  { %v3474_v63 = vpop.f32.mrf.mxu1 }
 0x2a1   :  { %v3475_v13 = vpop.f32.mrf.mxu1 }
 0x2a2   :  { %v3476_v10 = vadd.f32 %v3475_v13, %v3474_v63  ;;  %v3439_v63 = vadd.f32 %v3438_v29, %v3437_v43  ;;  %v3452_v29 = vpop.f32.mrf.mxu0 }
 0x2a3   :  { %v3477_v45 = vpop.f32.mrf.mxu1 }
 0x2a4   :  { %v2998_v56 = vadd.f32 %v3476_v10, %v2901_v30  ;;  %v2936_v10 = vadd.f32 %v3439_v63, %v4917_v20 }
 0x2a5   :  { %v3478_v59 = vpop.f32.mrf.mxu1 }
 0x2a6   :  { %3060 = vst [vmem:[#allocation5] sm:$0xff] %v2998_v56  ;;  %v3479_v33 = vadd.f32 %v3478_v59, %v3477_v45  ;;  %v3442_v45 = vadd.f32 %v3441_v3, %v3440_v27  ;;  %v3453_v27 = vpop.f32.mrf.mxu0 }
 0x2a7   :  { %v3480_v31 = vpop.f32.mrf.mxu1  ;;  %v3454_v23 = vadd.f32 %v3453_v27, %v3452_v29 }
 0x2a8   :  { %v3001_v50 = vadd.f32 %v3479_v33, %v2904_v12  ;;  %v2941_v16 = vadd.f32 %v3442_v45, %v4917_v20  ;;  %v3445_v33 = vadd.f32 %v3444_v18, %v3443_v0  ;;  %v3455_v3 = vpop.f32.mrf.mxu0 }
 0x2a9   :  { %v3481_v37 = vpop.f32.mrf.mxu1 }
 0x2aa   :  { %3061 = vst [vmem:[#allocation5 + $0x8] sm:$0xff] %v3001_v50  ;;  %v3482_v5 = vadd.f32 %v3481_v37, %v3480_v31  ;;  %v3456_v0 = vpop.f32.mrf.mxu0 }
 0x2ab   :  { %v3483_v57 = vpop.f32.mrf.mxu1  ;;  %v3457_v14 = vadd.f32 %v3456_v0, %v3455_v3 }
 0x2ac   :  { %v3006_v46 = vadd.f32 %v3482_v5, %v2909_v34  ;;  %v2944_v34 = vadd.f32 %v3445_v33, %v4917_v20 }
 0x2ad   :  { %v3484_v44 = vpop.f32.mrf.mxu1 }
 0x2ae   :  { %3062 = vst [vmem:[#allocation5 + $0x10] sm:$0xff] %v3006_v46  ;;  %v3485_v17 = vadd.f32 %v3484_v44, %v3483_v57 }
 0x2af   :  { %v3486_v6 = vpop.f32.mrf.mxu1 }
 0x2b0   :  { %v3009_v9 = vadd.f32 %v3485_v17, %v2912_v60  ;;  %v2949_v60 = vadd.f32 %v3448_v58, %v4917_v20 }
 0x2b1   :  { %v3487_v39 = vpop.f32.mrf.mxu1 }
 0x2b2   :  { %3063 = vst [vmem:[#allocation5 + $0x18] sm:$0xff] %v3009_v9  ;;  %v3488_v25 = vadd.f32 %v3487_v39, %v3486_v6 }
 0x2b3   :  { %v3489_v32 = vpop.f32.mrf.mxu1 }
 0x2b4   :  { %v3014_v54 = vadd.f32 %v3488_v25, %v2917_v1  ;;  %v2952_v1 = vadd.f32 %v3451_v15, %v4917_v20 }
 0x2b5   :  { %v3490_v7 = vpop.f32.mrf.mxu1 }
 0x2b6   :  { %3064 = vst [vmem:[#allocation5 + $0x20] sm:$0xff] %v3014_v54  ;;  %v3491_v62 = vadd.f32 %v3490_v7, %v3489_v32 }
 0x2b7   :  { %v3492_v19 = vpop.f32.mrf.mxu1 }
 0x2b8   :  { %v3017_v21 = vadd.f32 %v3491_v62, %v2920_v4  ;;  %v2957_v4 = vadd.f32 %v3454_v23, %v4917_v20 }
 0x2b9   :  { %v3493_v42 = vpop.f32.mrf.mxu1 }
 0x2ba   :  { %3065 = vst [vmem:[#allocation5 + $0x28] sm:$0xff] %v3017_v21  ;;  %v3494_v47 = vadd.f32 %v3493_v42, %v3492_v19  ;;  %v2960_v42 = vadd.f32 %v3457_v14, %v4917_v20 }
 0x2bb   :  { %v3495_v36 = vpop.f32.mrf.mxu1 }
 0x2bc   :  { %v3022_v22 = vadd.f32 %v3494_v47, %v2925_v52 }
 0x2bd   :  { %v3496_v49 = vpop.f32.mrf.mxu1 }
 0x2be   :  { %3066 = vst [vmem:[#allocation5 + $0x30] sm:$0xff] %v3022_v22  ;;  %v3497_v53 = vadd.f32 %v3496_v49, %v3495_v36 }
 0x2bf   :  { %v3498_v11 = vpop.f32.mrf.mxu1 }
 0x2c0   :  { %v3025_v24 = vadd.f32 %v3497_v53, %v2928_v40 }
 0x2c1   :  { %v3499_v26 = vpop.f32.mrf.mxu1 }
 0x2c2   :  { %3067 = vst [vmem:[#allocation5 + $0x38] sm:$0xff] %v3025_v24  ;;  %v3500_v51 = vadd.f32 %v3499_v26, %v3498_v11 }
 0x2c3   :  { %v3501_v13 = vpop.f32.mrf.mxu1 }
 0x2c4   :  { %v3030_v30 = vadd.f32 %v3500_v51, %v2933_v38 }
 0x2c5   :  { %v3502_v35 = vpop.f32.mrf.mxu1 }
 0x2c6   :  { %3068 = vst [vmem:[#allocation5 + $0x40] sm:$0xff] %v3030_v30  ;;  %v3503_v8 = vadd.f32 %v3502_v35, %v3501_v13 }
 0x2c7   :  { %v3504_v56 = vpop.f32.mrf.mxu1 }
 0x2c8   :  { %v3033_v59 = vadd.f32 %v3503_v8, %v2936_v10 }
 0x2c9   :  { %v3505_v12 = vpop.f32.mrf.mxu1 }
 0x2ca   :  { %3069 = vst [vmem:[#allocation5 + $0x48] sm:$0xff] %v3033_v59  ;;  %v3506_v43 = vadd.f32 %v3505_v12, %v3504_v56 }
 0x2cb   :  { %v3507_v31 = vpop.f32.mrf.mxu1 }
 0x2cc   :  { %v3038_v50 = vadd.f32 %v3506_v43, %v2941_v16 }
 0x2cd   :  { %v3508_v37 = vpop.f32.mrf.mxu1 }
 0x2ce   :  { %3070 = vst [vmem:[#allocation5 + $0x50] sm:$0xff] %v3038_v50  ;;  %v3509_v5 = vadd.f32 %v3508_v37, %v3507_v31 }
 0x2cf   :  { %v3510_v57 = vpop.f32.mrf.mxu1 }
 0x2d0   :  { %v3041_v46 = vadd.f32 %v3509_v5, %v2944_v34 }
 0x2d1   :  { %v3511_v44 = vpop.f32.mrf.mxu1 }
 0x2d2   :  { %3071 = vst [vmem:[#allocation5 + $0x58] sm:$0xff] %v3041_v46  ;;  %v3512_v17 = vadd.f32 %v3511_v44, %v3510_v57 }
 0x2d3   :  { %v3513_v6 = vpop.f32.mrf.mxu1 }
 0x2d4   :  { %v3046_v9 = vadd.f32 %v3512_v17, %v2949_v60 }
 0x2d5   :  { %v3514_v39 = vpop.f32.mrf.mxu1 }
 0x2d6   :  { %3072 = vst [vmem:[#allocation5 + $0x60] sm:$0xff] %v3046_v9  ;;  %v3515_v25 = vadd.f32 %v3514_v39, %v3513_v6 }
 0x2d7   :  { %v3516_v32 = vpop.f32.mrf.mxu1 }
 0x2d8   :  { %v3049_v54 = vadd.f32 %v3515_v25, %v2952_v1 }
 0x2d9   :  { %v3517_v7 = vpop.f32.mrf.mxu1 }
 0x2da   :  { %3073 = vst [vmem:[#allocation5 + $0x68] sm:$0xff] %v3049_v54  ;;  %v3518_v62 = vadd.f32 %v3517_v7, %v3516_v32 }
 0x2db   :  { %v3519_v18 = vpop.f32.mrf.mxu1 }
 0x2dc   :  { %v3054_v19 = vadd.f32 %v3518_v62, %v2957_v4 }
 0x2dd   :  { %v3520_v21 = vpop.f32.mrf.mxu1 }
 0x2de   :  { %3074 = vst [vmem:[#allocation5 + $0x70] sm:$0xff] %v3054_v19  ;;  %v3521_v52 = vadd.f32 %v3520_v21, %v3519_v18 }
 0x2e0   :  { %v3057_v41 = vadd.f32 %v3521_v52, %v2960_v42 }
 0x2e2   :  { %3075 = vst [vmem:[#allocation5 + $0x78] sm:$0xff] %v3057_v41 }
 0x2e3   :  { %3980 = shalt.err (!%p3977_p9)
}
 0x2e4   :  { %s3998_s20 = smov 128   ;;  %s3999_s21 = smov 8  }
 0x2e5   :  { %3087 = dma.vmem_to_hbm [thread:$0]  %s3082_s18, 2048, %s4943_s5, [#allocation4], %s3998_s20, %s3998_s20, %s3999_s21  }
 0x2e6   :  { %3991 = dma.done.wait [#allocation4], 2048  }
 0x2e7   :  { %3992 = vsyncadd [#allocation4], 4294965248 }
 0x2e8   :  { %3091 = vsyncpa [#allocation3], 1 }
 0x2e9   :  { %3092 = vsyncpa [#allocation4], 1 }

</bundles_post_ra>
